<compile_context>
chip_gen: v5e
topology: v5e:2x2
jax: 0.10.0
libtpu: 0.0.40
codegen_flags: <defaults>
</compile_context>

<pallas_src>
import functools

import jax
import jax.numpy as jnp
import numpy as np
from jax.experimental import pallas as pl
from jax.experimental.pallas import tpu as pltpu


def _layernorm(x, w, b, eps=1e-5):
    mu = jnp.mean(x, axis=-1, keepdims=True)
    var = jnp.mean((x - mu) ** 2, axis=-1, keepdims=True)
    return (x - mu) * jax.lax.rsqrt(var + eps) * w + b


# vec_ref row layout (per layer, each row is (D,)):
#   0: attn_ln_w   1: attn_ln_b
#   2: in_proj_b[q] 3: in_proj_b[k] 4: in_proj_b[v]
#   5: out_proj_b
#   6: mlp_ln_w    7: mlp_ln_b
#   8: cproj_b
def style_transformer_kernel(
    style_ref,        # (1, num_tokens, D)            bf16  (constant)
    x_ref,            # (Btile, S, D)                 bf16  (per batch tile)
    ln_pack_ref,      # (4, D)                        f32   [ln1_w, ln1_b, ln2_w, ln2_b]
    vec_ref,          # (1, 9, D)                     f32   per-layer small vectors
    fcb_ref,          # (1, 1, 4D)                    f32   per-layer c_fc bias
    in_proj_w_ref,    # (1, D, 3D)                    bf16  per layer
    out_proj_w_ref,   # (1, D, D)                     bf16  per layer
    fc_w_ref,         # (1, D, 4D)                    bf16  per layer
    cproj_w_ref,      # (1, 4D, D)                    bf16  per layer
    proj_ref,         # (D, out_dim)                  bf16  (constant)
    o_ref,            # (Btile, num_tokens, out_dim)  f32
    h_ref,            # VMEM scratch (Btile*L, D) f32 — running activations (persists over layers)
    attn_ref,         # VMEM scratch (Btile*L, D) f32 — per-head output slab
    *, num_heads, num_tokens, btile,
):
    layer = pl.program_id(1)
    n_layers = pl.num_programs(1)
    M, D = h_ref.shape
    S = x_ref.shape[1]
    L = num_tokens + S
    hd = D // num_heads
    scale = 1.0 / (hd ** 0.5)
    bf16, f32 = jnp.bfloat16, jnp.float32

    # ---- layer 0: assemble concat([style_emb, x_b]) in VMEM and apply ln1 ----
    @pl.when(layer == 0)
    def _init():
        ln1_w = ln_pack_ref[0]
        ln1_b = ln_pack_ref[1]
        # LayerNorm is row-wise, so normalizing the pieces separately is identical
        # to normalizing the concatenation.
        style_n = _layernorm(style_ref[0].astype(f32), ln1_w, ln1_b)
        for b in range(btile):
            r0 = b * L
            h_ref[r0:r0 + num_tokens, :] = style_n
            h_ref[r0 + num_tokens:r0 + L, :] = _layernorm(
                x_ref[b].astype(f32), ln1_w, ln1_b)

    h = h_ref[...]                                            # (Btile*L, D) f32
    vec = vec_ref[0]                                          # (9, D) f32

    # ---- attention block: h = h + out_proj(MHA(ln_1(h))) ----
    h_ln = _layernorm(h, vec[0], vec[1])
    qkv = jnp.dot(h_ln.astype(bf16), in_proj_w_ref[0],
                  preferred_element_type=f32)                 # (M, 3D) f32
    q = ((qkv[:, 0 * D:1 * D] + vec[2]) * scale).astype(bf16)   # fold scale in once
    k = (qkv[:, 1 * D:2 * D] + vec[3]).astype(bf16)
    v = (qkv[:, 2 * D:3 * D] + vec[4]).astype(bf16)

    # Strictly per-(batch, head): no cross-batch mixing of the stacked rows.
    for b in range(btile):
        r0 = b * L
        for hh in range(num_heads):
            c0 = hh * hd
            q_h = q[r0:r0 + L, c0:c0 + hd]
            k_h = k[r0:r0 + L, c0:c0 + hd]
            v_h = v[r0:r0 + L, c0:c0 + hd]
            s = jnp.einsum("qd,kd->qk", q_h, k_h,
                           preferred_element_type=f32)        # (L, L) f32
            s = s - jnp.max(s, axis=-1, keepdims=True)
            p = jnp.exp(s)
            p = p * pl.reciprocal(jnp.sum(p, axis=-1, keepdims=True), approx=True)
            attn_ref[r0:r0 + L, c0:c0 + hd] = jnp.dot(
                p.astype(bf16), v_h, preferred_element_type=f32)

    attn = (jnp.dot(attn_ref[...].astype(bf16), out_proj_w_ref[0],
                    preferred_element_type=f32) + vec[5])
    h = h + attn

    # ---- MLP block: h = h + c_proj(QuickGELU(c_fc(ln_2(h)))) ----
    h_ln = _layernorm(h, vec[6], vec[7])
    f = (jnp.dot(h_ln.astype(bf16), fc_w_ref[0],
                 preferred_element_type=f32) + fcb_ref[0, 0])  # (M, 4D) f32
    f = f * jax.nn.sigmoid(1.702 * f)                          # QuickGELU (EUP)
    f = (jnp.dot(f.astype(bf16), cproj_w_ref[0],
                 preferred_element_type=f32) + vec[8])
    h = h + f
    h_ref[...] = h

    # ---- last layer: take style tokens, ln2, final projection, store ----
    @pl.when(layer == n_layers - 1)
    def _final():
        ln2_w = ln_pack_ref[2]
        ln2_b = ln_pack_ref[3]
        for b in range(btile):
            r0 = b * L
            tok = _layernorm(h[r0:r0 + num_tokens, :], ln2_w, ln2_b)
            out = jnp.dot(tok.astype(bf16), proj_ref[...],
                          preferred_element_type=f32)
            o_ref[b] = out.astype(o_ref.dtype)


def style_transformer_forward(x, params, *, num_heads, num_tokens, n_layers,
                              btile=None):
    B, S, D = x.shape
    L = num_tokens + S
    out_dim = params["proj"].shape[1]
    f32, bf16 = jnp.float32, jnp.bfloat16

    if btile is None:
        btile = next(c for c in (4, 2, 1) if B % c == 0)
    assert B % btile == 0, "batch must be divisible by the batch tile"

    # ---- pack the small per-layer f32 vectors -> 2 DMAs/layer instead of 8 ----
    in_b = params["in_proj_b"].reshape(n_layers, 3, D)
    vec_pack = jnp.stack(
        [params["attn_ln_w"], params["attn_ln_b"],
         in_b[:, 0], in_b[:, 1], in_b[:, 2],
         params["out_proj_b"],
         params["mlp_ln_w"], params["mlp_ln_b"],
         params["cproj_b"]], axis=1).astype(f32)              # (n_layers, 9, D)
    fcb_pack = params["fc_b"].astype(f32)[:, None, :]         # (n_layers, 1, 4D)
    ln_pack = jnp.stack([params["ln1_w"], params["ln1_b"],
                         params["ln2_w"], params["ln2_b"]], axis=0).astype(f32)

    kernel = functools.partial(
        style_transformer_kernel, num_heads=num_heads, num_tokens=num_tokens,
        btile=btile)

    def const_spec(shape):
        # same block every grid step (constant across batch tile and layer)
        n = len(shape)
        return pl.BlockSpec(shape, lambda b, l, _n=n: (0,) * _n)

    def layer_spec(tail):
        # one layer's slice per inner grid step -> double-buffered weight DMA
        n = len(tail)
        return pl.BlockSpec((1,) + tuple(tail),
                            lambda b, l, _n=n: (l,) + (0,) * _n)

    in_specs = [
        const_spec((1, num_tokens, D)),                       # style_emb
        pl.BlockSpec((btile, S, D), lambda b, l: (b, 0, 0)),  # x (batch tile)
        const_spec((4, D)),                                   # ln1 / ln2 pack
        layer_spec((9, D)),                                   # per-layer small vectors
        layer_spec((1, 4 * D)),                               # c_fc bias
        layer_spec((D, 3 * D)),                               # in_proj W
        layer_spec((D, D)),                                   # out_proj W
        layer_spec((D, 4 * D)),                               # c_fc W
        layer_spec((4 * D, D)),                               # c_proj W
        const_spec((D, out_dim)),                             # final proj
    ]
    out_spec = pl.BlockSpec((btile, num_tokens, out_dim), lambda b, l: (b, 0, 0))

    # ---- explicit VMEM budget: double-buffered per-layer weights + scratch ----
    w_layer = 2 * (D * 3 * D + D * D + D * 4 * D + 4 * D * D)   # bf16 bytes / layer
    small_layer = 4 * (9 * D + 4 * D)
    consts = 2 * (num_tokens * D + D * out_dim) + 4 * 4 * D
    scratch = 2 * (btile * L * D * 4)                           # h + attn slab (f32)
    io = 2 * (btile * S * D * 2 + btile * num_tokens * out_dim * 4)
    vmem_limit = int(min(max(2 * (w_layer + small_layer) + 2 * consts
                             + scratch + io + (8 << 20), 32 << 20), 100 << 20))

    flops = int(2 * B * n_layers * L * D * (12 * D)             # qkv/out/fc/cproj
                + 4 * B * n_layers * L * L * D                  # QK^T + PV
                + 2 * B * num_tokens * D * out_dim)             # final proj
    transcendentals = int(B * n_layers * (4 * L * D + num_heads * L * L + L))
    bytes_accessed = int((B // btile) * n_layers * (w_layer + small_layer)
                         + B * S * D * 2 + B * num_tokens * out_dim * 4 + consts)

    return pl.pallas_call(
        kernel,
        grid=(B // btile, n_layers),
        in_specs=in_specs,
        out_specs=out_spec,
        out_shape=jax.ShapeDtypeStruct((B, num_tokens, out_dim), jnp.float32),
        scratch_shapes=[pltpu.VMEM((btile * L, D), jnp.float32),   # running h
                        pltpu.VMEM((btile * L, D), jnp.float32)],  # head-output slab
        compiler_params=pltpu.CompilerParams(
            dimension_semantics=("parallel", "arbitrary"),
            vmem_limit_bytes=vmem_limit),
        cost_estimate=pl.CostEstimate(flops=flops,
                                      transcendentals=transcendentals,
                                      bytes_accessed=bytes_accessed),
    )(params["style_emb"].astype(bf16), x.astype(bf16),
      ln_pack, vec_pack, fcb_pack,
      params["in_proj_w"], params["out_proj_w"],
      params["fc_w"], params["cproj_w"], params["proj"])


def reference_forward(x, params, *, num_heads, num_tokens, n_layers):
    """Pure-JAX reference mirroring the PyTorch module semantics with the same
    numerics policy as the kernel (bf16 matmul operands, f32 accumulate/elementwise)."""
    B, S, D = x.shape
    hd = D // num_heads
    scale = 1.0 / (hd ** 0.5)
    bf16, f32 = jnp.bfloat16, jnp.float32

    def ln(t, w, b, eps=1e-5):
        mu = jnp.mean(t, -1, keepdims=True)
        var = jnp.mean((t - mu) ** 2, -1, keepdims=True)
        return (t - mu) * jax.lax.rsqrt(var + eps) * w + b

    def mm(a, w):
        return jnp.einsum("...d,dk->...k", a.astype(bf16), w.astype(bf16),
                          preferred_element_type=f32)

    style = jnp.broadcast_to(params["style_emb"].astype(f32), (B, num_tokens, D))
    h = jnp.concatenate([style, x.astype(bf16).astype(f32)], axis=1)
    h = ln(h, params["ln1_w"], params["ln1_b"])
    for l in range(n_layers):
        x_ln = ln(h, params["attn_ln_w"][l], params["attn_ln_b"][l])
        qkv = mm(x_ln, params["in_proj_w"][l]) + params["in_proj_b"][l]
        q, k, v = jnp.split(qkv, 3, axis=-1)
        q = (q * scale).astype(bf16).reshape(B, -1, num_heads, hd).transpose(0, 2, 1, 3)
        k = k.astype(bf16).reshape(B, -1, num_heads, hd).transpose(0, 2, 1, 3)
        v = v.astype(bf16).reshape(B, -1, num_heads, hd).transpose(0, 2, 1, 3)
        s = jnp.einsum("bhqd,bhkd->bhqk", q, k, preferred_element_type=f32)
        p = jax.nn.softmax(s, axis=-1)
        o = jnp.einsum("bhqk,bhkd->bhqd", p.astype(bf16), v,
                       preferred_element_type=f32)
        o = o.transpose(0, 2, 1, 3).reshape(B, -1, D)
        o = mm(o, params["out_proj_w"][l]) + params["out_proj_b"][l]
        h = h + o
        x_ln = ln(h, params["mlp_ln_w"][l], params["mlp_ln_b"][l])
        f = mm(x_ln, params["fc_w"][l]) + params["fc_b"][l]
        f = f * jax.nn.sigmoid(1.702 * f)
        f = mm(f, params["cproj_w"][l]) + params["cproj_b"][l]
        h = h + f
    tok = ln(h[:, :num_tokens, :], params["ln2_w"], params["ln2_b"])
    return jnp.einsum("btd,de->bte", tok.astype(bf16),
                      params["proj"].astype(bf16), preferred_element_type=f32)


def init_params(key, *, in_dim, out_dim, num_tokens, n_layers):
    D = in_dim
    scale = D ** (-0.5)
    ks = jax.random.split(key, 18)
    f32, bf16 = jnp.float32, jnp.bfloat16
    return {
        "style_emb": (jax.random.normal(ks[0], (1, num_tokens, D)) * scale).astype(bf16),
        "ln1_w": (1.0 + 0.1 * jax.random.normal(ks[10], (D,))).astype(f32),
        "ln1_b": (0.05 * jax.random.normal(ks[11], (D,))).astype(f32),
        "ln2_w": (1.0 + 0.1 * jax.random.normal(ks[12], (D,))).astype(f32),
        "ln2_b": (0.05 * jax.random.normal(ks[13], (D,))).astype(f32),
        "attn_ln_w": (1.0 + 0.1 * jax.random.normal(ks[14], (n_layers, D))).astype(f32),
        "attn_ln_b": (0.05 * jax.random.normal(ks[15], (n_layers, D))).astype(f32),
        "mlp_ln_w": (1.0 + 0.1 * jax.random.normal(ks[16], (n_layers, D))).astype(f32),
        "mlp_ln_b": (0.05 * jax.random.normal(ks[17], (n_layers, D))).astype(f32),
        # linear weights stored as (in, out), bf16 (MXU-native) -> kernel does x @ W + b
        "in_proj_w": (jax.random.normal(ks[1], (n_layers, D, 3 * D)) * 0.05).astype(bf16),
        "in_proj_b": (jax.random.normal(ks[2], (n_layers, 3 * D)) * 0.02).astype(f32),
        "out_proj_w": (jax.random.normal(ks[3], (n_layers, D, D)) * 0.05).astype(bf16),
        "out_proj_b": (jax.random.normal(ks[4], (n_layers, D)) * 0.02).astype(f32),
        "fc_w": (jax.random.normal(ks[5], (n_layers, D, 4 * D)) * 0.05).astype(bf16),
        "fc_b": (jax.random.normal(ks[6], (n_layers, 4 * D)) * 0.02).astype(f32),
        "cproj_w": (jax.random.normal(ks[7], (n_layers, 4 * D, D)) * 0.05).astype(bf16),
        "cproj_b": (jax.random.normal(ks[8], (n_layers, D)) * 0.02).astype(f32),
        "proj": (jax.random.normal(ks[9], (D, out_dim)) * scale).astype(bf16),
    }


if __name__ == "__main__":
    # Small shapes consistent with the module (downscaled from in_dim=1024 etc.)
    B, S = 2, 8
    in_dim, out_dim = 32, 32
    num_heads, num_tokens, n_layers = 4, 4, 2

    key = jax.random.PRNGKey(0)
    k_x, k_p = jax.random.split(key)
    x = jax.random.normal(k_x, (B, S, in_dim), dtype=jnp.float32)
    params = init_params(k_p, in_dim=in_dim, out_dim=out_dim,
                         num_tokens=num_tokens, n_layers=n_layers)

    out = style_transformer_forward(
        x, params, num_heads=num_heads, num_tokens=num_tokens, n_layers=n_layers)
    out = jax.block_until_ready(out)

    ref = jax.block_until_ready(reference_forward(
        x, params, num_heads=num_heads, num_tokens=num_tokens, n_layers=n_layers))

    assert out.shape == (B, num_tokens, out_dim)
    np.testing.assert_allclose(np.asarray(out), np.asarray(ref), atol=2e-2, rtol=2e-2)
    print("KERNEL_OK")
</pallas_src>

<mosaic_0001>
module attributes {stable_mosaic.version = 11 : i64} {
  func.func @style_transformer_kernel(%arg0: i32, %arg1: i32, %arg2: memref<1x4x32xbf16, #tpu.memory_space<vmem>>, %arg3: memref<2x8x32xbf16, #tpu.memory_space<vmem>>, %arg4: memref<4x32xf32, #tpu.memory_space<vmem>>, %arg5: memref<1x9x32xf32, #tpu.memory_space<vmem>>, %arg6: memref<1x1x128xf32, #tpu.memory_space<vmem>>, %arg7: memref<1x32x96xbf16, #tpu.memory_space<vmem>>, %arg8: memref<1x32x32xbf16, #tpu.memory_space<vmem>>, %arg9: memref<1x32x128xbf16, #tpu.memory_space<vmem>>, %arg10: memref<1x128x32xbf16, #tpu.memory_space<vmem>>, %arg11: memref<32x32xbf16, #tpu.memory_space<vmem>>, %arg12: memref<2x4x32xf32, #tpu.memory_space<vmem>>, %arg13: memref<24x32xf32, #tpu.memory_space<vmem>>, %arg14: memref<24x32xf32, #tpu.memory_space<vmem>>) attributes {dimension_semantics = [#tpu.dimension_semantics<parallel>, #tpu.dimension_semantics<arbitrary>], iteration_bounds = array<i64: 1, 2>, scalar_prefetch = 0 : i64, scratch_operands = 2 : i64, tpu.core_type = #tpu.core_type<tc>, window_params = [{pipeline_mode = #tpu.pipeline_mode<synchronous>, transform_indices = @transform_0, window_bounds = array<i64: 1, 4, 32>}, {transform_indices = @transform_1, window_bounds = array<i64: 2, 8, 32>}, {pipeline_mode = #tpu.pipeline_mode<synchronous>, transform_indices = @transform_2, window_bounds = array<i64: 4, 32>}, {transform_indices = @transform_3, window_bounds = array<i64: 1, 9, 32>}, {transform_indices = @transform_4, window_bounds = array<i64: 1, 1, 128>}, {transform_indices = @transform_5, window_bounds = array<i64: 1, 32, 96>}, {transform_indices = @transform_6, window_bounds = array<i64: 1, 32, 32>}, {transform_indices = @transform_7, window_bounds = array<i64: 1, 32, 128>}, {transform_indices = @transform_8, window_bounds = array<i64: 1, 128, 32>}, {pipeline_mode = #tpu.pipeline_mode<synchronous>, transform_indices = @transform_9, window_bounds = array<i64: 32, 32>}, {transform_indices = @transform_10, window_bounds = array<i64: 2, 4, 32>}]} {
    %c0_i32 = arith.constant 0 : i32
    %0 = arith.cmpi eq, %arg1, %c0_i32 : i32
    %1 = arith.extui %0 : i1 to i32
    %c0_i32_0 = arith.constant 0 : i32
    %2 = arith.cmpi ne, %1, %c0_i32_0 : i32
    scf.if %2 {
      %c0_85 = arith.constant 0 : index
      %c0_86 = arith.constant 0 : index
      %267 = vector.load %arg4[%c0_85, %c0_86] : memref<4x32xf32, #tpu.memory_space<vmem>>, vector<1x32xf32>
      %268 = vector.shape_cast %267 : vector<1x32xf32> to vector<32xf32>
      %c1 = arith.constant 1 : index
      %c0_87 = arith.constant 0 : index
      %269 = vector.load %arg4[%c1, %c0_87] : memref<4x32xf32, #tpu.memory_space<vmem>>, vector<1x32xf32>
      %270 = vector.shape_cast %269 : vector<1x32xf32> to vector<32xf32>
      %c0_88 = arith.constant 0 : index
      %c0_89 = arith.constant 0 : index
      %c0_90 = arith.constant 0 : index
      %271 = vector.load %arg2[%c0_88, %c0_89, %c0_90] : memref<1x4x32xbf16, #tpu.memory_space<vmem>>, vector<1x4x32xbf16>
      %272 = vector.shape_cast %271 : vector<1x4x32xbf16> to vector<4x32xbf16>
      %273 = arith.extf %272 : vector<4x32xbf16> to vector<4x32xf32>
      %cst_91 = arith.constant dense<0.000000e+00> : vector<4xf32>
      %274 = vector.multi_reduction <add>, %273, %cst_91 [1] : vector<4x32xf32> to vector<4xf32>
      %275 = vector.shape_cast %274 : vector<4xf32> to vector<4x1xf32>
      %cst_92 = arith.constant 3.200000e+01 : f32
      %276 = vector.broadcast %cst_92 : f32 to vector<4x1xf32>
      %277 = arith.divf %275, %276 : vector<4x1xf32>
      %278 = vector.broadcast %277 : vector<4x1xf32> to vector<4x32xf32>
      %279 = arith.subf %273, %278 : vector<4x32xf32>
      %280 = arith.mulf %279, %279 : vector<4x32xf32>
      %cst_93 = arith.constant dense<0.000000e+00> : vector<4xf32>
      %281 = vector.multi_reduction <add>, %280, %cst_93 [1] : vector<4x32xf32> to vector<4xf32>
      %282 = vector.shape_cast %281 : vector<4xf32> to vector<4x1xf32>
      %cst_94 = arith.constant 3.200000e+01 : f32
      %283 = vector.broadcast %cst_94 : f32 to vector<4x1xf32>
      %284 = arith.divf %282, %283 : vector<4x1xf32>
      %285 = vector.broadcast %277 : vector<4x1xf32> to vector<4x32xf32>
      %286 = arith.subf %273, %285 : vector<4x32xf32>
      %cst_95 = arith.constant 9.99999974E-6 : f32
      %287 = vector.broadcast %cst_95 : f32 to vector<4x1xf32>
      %288 = arith.addf %284, %287 : vector<4x1xf32>
      %289 = math.rsqrt %288 : vector<4x1xf32>
      %290 = vector.broadcast %289 : vector<4x1xf32> to vector<4x32xf32>
      %291 = arith.mulf %286, %290 : vector<4x32xf32>
      %292 = vector.shape_cast %268 : vector<32xf32> to vector<1x32xf32>
      %293 = vector.broadcast %292 : vector<1x32xf32> to vector<4x32xf32>
      %294 = arith.mulf %291, %293 : vector<4x32xf32>
      %295 = vector.shape_cast %270 : vector<32xf32> to vector<1x32xf32>
      %296 = vector.broadcast %295 : vector<1x32xf32> to vector<4x32xf32>
      %297 = arith.addf %294, %296 : vector<4x32xf32>
      %c0_96 = arith.constant 0 : index
      %c0_97 = arith.constant 0 : index
      %298 = vector.load %arg13[%c0_96, %c0_97] : memref<24x32xf32, #tpu.memory_space<vmem>>, vector<4x32xf32>
      tpu.vector_store %arg13[%c0_96, %c0_97], %297 {strides = array<i32>} : memref<24x32xf32, #tpu.memory_space<vmem>>, vector<4x32xf32>,
      %c0_98 = arith.constant 0 : index
      %c0_99 = arith.constant 0 : index
      %c0_100 = arith.constant 0 : index
      %299 = vector.load %arg3[%c0_98, %c0_99, %c0_100] : memref<2x8x32xbf16, #tpu.memory_space<vmem>>, vector<1x8x32xbf16>
      %300 = vector.shape_cast %299 : vector<1x8x32xbf16> to vector<8x32xbf16>
      %301 = arith.extf %300 : vector<8x32xbf16> to vector<8x32xf32>
      %cst_101 = arith.constant dense<0.000000e+00> : vector<8xf32>
      %302 = vector.multi_reduction <add>, %301, %cst_101 [1] : vector<8x32xf32> to vector<8xf32>
      %303 = vector.shape_cast %302 : vector<8xf32> to vector<8x1xf32>
      %cst_102 = arith.constant 3.200000e+01 : f32
      %304 = vector.broadcast %cst_102 : f32 to vector<8x1xf32>
      %305 = arith.divf %303, %304 : vector<8x1xf32>
      %306 = vector.broadcast %305 : vector<8x1xf32> to vector<8x32xf32>
      %307 = arith.subf %301, %306 : vector<8x32xf32>
      %308 = arith.mulf %307, %307 : vector<8x32xf32>
      %cst_103 = arith.constant dense<0.000000e+00> : vector<8xf32>
      %309 = vector.multi_reduction <add>, %308, %cst_103 [1] : vector<8x32xf32> to vector<8xf32>
      %310 = vector.shape_cast %309 : vector<8xf32> to vector<8x1xf32>
      %cst_104 = arith.constant 3.200000e+01 : f32
      %311 = vector.broadcast %cst_104 : f32 to vector<8x1xf32>
      %312 = arith.divf %310, %311 : vector<8x1xf32>
      %313 = vector.broadcast %305 : vector<8x1xf32> to vector<8x32xf32>
      %314 = arith.subf %301, %313 : vector<8x32xf32>
      %cst_105 = arith.constant 9.99999974E-6 : f32
      %315 = vector.broadcast %cst_105 : f32 to vector<8x1xf32>
      %316 = arith.addf %312, %315 : vector<8x1xf32>
      %317 = math.rsqrt %316 : vector<8x1xf32>
      %318 = vector.broadcast %317 : vector<8x1xf32> to vector<8x32xf32>
      %319 = arith.mulf %314, %318 : vector<8x32xf32>
      %320 = vector.shape_cast %268 : vector<32xf32> to vector<1x32xf32>
      %321 = vector.broadcast %320 : vector<1x32xf32> to vector<8x32xf32>
      %322 = arith.mulf %319, %321 : vector<8x32xf32>
      %323 = vector.shape_cast %270 : vector<32xf32> to vector<1x32xf32>
      %324 = vector.broadcast %323 : vector<1x32xf32> to vector<8x32xf32>
      %325 = arith.addf %322, %324 : vector<8x32xf32>
      %c4 = arith.constant 4 : index
      %c0_106 = arith.constant 0 : index
      %326 = vector.load %arg13[%c4, %c0_106] : memref<24x32xf32, #tpu.memory_space<vmem>>, vector<8x32xf32>
      tpu.vector_store %arg13[%c4, %c0_106], %325 {strides = array<i32>} : memref<24x32xf32, #tpu.memory_space<vmem>>, vector<8x32xf32>,
      %c12_107 = arith.constant 12 : index
      %c0_108 = arith.constant 0 : index
      %327 = vector.load %arg13[%c12_107, %c0_108] : memref<24x32xf32, #tpu.memory_space<vmem>>, vector<4x32xf32>
      tpu.vector_store %arg13[%c12_107, %c0_108], %297 {strides = array<i32>} : memref<24x32xf32, #tpu.memory_space<vmem>>, vector<4x32xf32>,
      %c1_109 = arith.constant 1 : index
      %c0_110 = arith.constant 0 : index
      %c0_111 = arith.constant 0 : index
      %328 = vector.load %arg3[%c1_109, %c0_110, %c0_111] : memref<2x8x32xbf16, #tpu.memory_space<vmem>>, vector<1x8x32xbf16>
      %329 = vector.shape_cast %328 : vector<1x8x32xbf16> to vector<8x32xbf16>
      %330 = arith.extf %329 : vector<8x32xbf16> to vector<8x32xf32>
      %cst_112 = arith.constant dense<0.000000e+00> : vector<8xf32>
      %331 = vector.multi_reduction <add>, %330, %cst_112 [1] : vector<8x32xf32> to vector<8xf32>
      %332 = vector.shape_cast %331 : vector<8xf32> to vector<8x1xf32>
      %cst_113 = arith.constant 3.200000e+01 : f32
      %333 = vector.broadcast %cst_113 : f32 to vector<8x1xf32>
      %334 = arith.divf %332, %333 : vector<8x1xf32>
      %335 = vector.broadcast %334 : vector<8x1xf32> to vector<8x32xf32>
      %336 = arith.subf %330, %335 : vector<8x32xf32>
      %337 = arith.mulf %336, %336 : vector<8x32xf32>
      %cst_114 = arith.constant dense<0.000000e+00> : vector<8xf32>
      %338 = vector.multi_reduction <add>, %337, %cst_114 [1] : vector<8x32xf32> to vector<8xf32>
      %339 = vector.shape_cast %338 : vector<8xf32> to vector<8x1xf32>
      %cst_115 = arith.constant 3.200000e+01 : f32
      %340 = vector.broadcast %cst_115 : f32 to vector<8x1xf32>
      %341 = arith.divf %339, %340 : vector<8x1xf32>
      %342 = vector.broadcast %334 : vector<8x1xf32> to vector<8x32xf32>
      %343 = arith.subf %330, %342 : vector<8x32xf32>
      %cst_116 = arith.constant 9.99999974E-6 : f32
      %344 = vector.broadcast %cst_116 : f32 to vector<8x1xf32>
      %345 = arith.addf %341, %344 : vector<8x1xf32>
      %346 = math.rsqrt %345 : vector<8x1xf32>
      %347 = vector.broadcast %346 : vector<8x1xf32> to vector<8x32xf32>
      %348 = arith.mulf %343, %347 : vector<8x32xf32>
      %349 = vector.shape_cast %268 : vector<32xf32> to vector<1x32xf32>
      %350 = vector.broadcast %349 : vector<1x32xf32> to vector<8x32xf32>
      %351 = arith.mulf %348, %350 : vector<8x32xf32>
      %352 = vector.shape_cast %270 : vector<32xf32> to vector<1x32xf32>
      %353 = vector.broadcast %352 : vector<1x32xf32> to vector<8x32xf32>
      %354 = arith.addf %351, %353 : vector<8x32xf32>
      %c16_117 = arith.constant 16 : index
      %c0_118 = arith.constant 0 : index
      %355 = vector.load %arg13[%c16_117, %c0_118] : memref<24x32xf32, #tpu.memory_space<vmem>>, vector<8x32xf32>
      tpu.vector_store %arg13[%c16_117, %c0_118], %354 {strides = array<i32>} : memref<24x32xf32, #tpu.memory_space<vmem>>, vector<8x32xf32>,
    } else {
    }
    %c0 = arith.constant 0 : index
    %c0_1 = arith.constant 0 : index
    %3 = vector.load %arg13[%c0, %c0_1] : memref<24x32xf32, #tpu.memory_space<vmem>>, vector<24x32xf32>
    %c0_2 = arith.constant 0 : index
    %c0_3 = arith.constant 0 : index
    %c0_4 = arith.constant 0 : index
    %4 = vector.load %arg5[%c0_2, %c0_3, %c0_4] : memref<1x9x32xf32, #tpu.memory_space<vmem>>, vector<1x9x32xf32>
    %5 = vector.shape_cast %4 : vector<1x9x32xf32> to vector<9x32xf32>
    %6 = vector.extract_strided_slice %5 {offsets = [0, 0], sizes = [1, 32], strides = [1, 1]} : vector<9x32xf32> to vector<1x32xf32>
    %7 = vector.shape_cast %6 : vector<1x32xf32> to vector<32xf32>
    %8 = vector.extract_strided_slice %5 {offsets = [1, 0], sizes = [1, 32], strides = [1, 1]} : vector<9x32xf32> to vector<1x32xf32>
    %9 = vector.shape_cast %8 : vector<1x32xf32> to vector<32xf32>
    %cst = arith.constant dense<0.000000e+00> : vector<24xf32>
    %10 = vector.multi_reduction <add>, %3, %cst [1] : vector<24x32xf32> to vector<24xf32>
    %11 = vector.shape_cast %10 : vector<24xf32> to vector<24x1xf32>
    %cst_5 = arith.constant 3.200000e+01 : f32
    %12 = vector.broadcast %cst_5 : f32 to vector<24x1xf32>
    %13 = arith.divf %11, %12 : vector<24x1xf32>
    %14 = vector.broadcast %13 : vector<24x1xf32> to vector<24x32xf32>
    %15 = arith.subf %3, %14 : vector<24x32xf32>
    %16 = arith.mulf %15, %15 : vector<24x32xf32>
    %cst_6 = arith.constant dense<0.000000e+00> : vector<24xf32>
    %17 = vector.multi_reduction <add>, %16, %cst_6 [1] : vector<24x32xf32> to vector<24xf32>
    %18 = vector.shape_cast %17 : vector<24xf32> to vector<24x1xf32>
    %cst_7 = arith.constant 3.200000e+01 : f32
    %19 = vector.broadcast %cst_7 : f32 to vector<24x1xf32>
    %20 = arith.divf %18, %19 : vector<24x1xf32>
    %21 = vector.broadcast %13 : vector<24x1xf32> to vector<24x32xf32>
    %22 = arith.subf %3, %21 : vector<24x32xf32>
    %cst_8 = arith.constant 9.99999974E-6 : f32
    %23 = vector.broadcast %cst_8 : f32 to vector<24x1xf32>
    %24 = arith.addf %20, %23 : vector<24x1xf32>
    %25 = math.rsqrt %24 : vector<24x1xf32>
    %26 = vector.broadcast %25 : vector<24x1xf32> to vector<24x32xf32>
    %27 = arith.mulf %22, %26 : vector<24x32xf32>
    %28 = vector.shape_cast %7 : vector<32xf32> to vector<1x32xf32>
    %29 = vector.broadcast %28 : vector<1x32xf32> to vector<24x32xf32>
    %30 = arith.mulf %27, %29 : vector<24x32xf32>
    %31 = vector.shape_cast %9 : vector<32xf32> to vector<1x32xf32>
    %32 = vector.broadcast %31 : vector<1x32xf32> to vector<24x32xf32>
    %33 = arith.addf %30, %32 : vector<24x32xf32>
    %34 = arith.truncf %33 : vector<24x32xf32> to vector<24x32xbf16>
    %c0_9 = arith.constant 0 : index
    %c0_10 = arith.constant 0 : index
    %c0_11 = arith.constant 0 : index
    %35 = vector.load %arg7[%c0_9, %c0_10, %c0_11] : memref<1x32x96xbf16, #tpu.memory_space<vmem>>, vector<1x32x96xbf16>
    %36 = vector.shape_cast %35 : vector<1x32x96xbf16> to vector<32x96xbf16>
    %cst_12 = arith.constant dense<0.000000e+00> : vector<24x96xf32>
    %37 = tpu.matmul %34, %36, %cst_12 {dimension_numbers = #tpu.dot_dimension_numbers<[1], [0], [0], [1], [0, 0, 1, 1], [], []>} : vector<24x32xbf16>, vector<32x96xbf16>, vector<24x96xf32> -> vector<24x96xf32>
    %38 = vector.extract_strided_slice %37 {offsets = [0, 0], sizes = [24, 32], strides = [1, 1]} : vector<24x96xf32> to vector<24x32xf32>
    %39 = vector.extract_strided_slice %5 {offsets = [2, 0], sizes = [1, 32], strides = [1, 1]} : vector<9x32xf32> to vector<1x32xf32>
    %40 = vector.shape_cast %39 : vector<1x32xf32> to vector<32xf32>
    %41 = vector.shape_cast %40 : vector<32xf32> to vector<1x32xf32>
    %42 = vector.broadcast %41 : vector<1x32xf32> to vector<24x32xf32>
    %43 = arith.addf %38, %42 : vector<24x32xf32>
    %cst_13 = arith.constant 0.353553385 : f32
    %44 = vector.broadcast %cst_13 : f32 to vector<24x32xf32>
    %45 = arith.mulf %43, %44 : vector<24x32xf32>
    %46 = arith.truncf %45 : vector<24x32xf32> to vector<24x32xbf16>
    %47 = vector.extract_strided_slice %37 {offsets = [0, 32], sizes = [24, 32], strides = [1, 1]} : vector<24x96xf32> to vector<24x32xf32>
    %48 = vector.extract_strided_slice %5 {offsets = [3, 0], sizes = [1, 32], strides = [1, 1]} : vector<9x32xf32> to vector<1x32xf32>
    %49 = vector.shape_cast %48 : vector<1x32xf32> to vector<32xf32>
    %50 = vector.shape_cast %49 : vector<32xf32> to vector<1x32xf32>
    %51 = vector.broadcast %50 : vector<1x32xf32> to vector<24x32xf32>
    %52 = arith.addf %47, %51 : vector<24x32xf32>
    %53 = arith.truncf %52 : vector<24x32xf32> to vector<24x32xbf16>
    %54 = vector.extract_strided_slice %37 {offsets = [0, 64], sizes = [24, 32], strides = [1, 1]} : vector<24x96xf32> to vector<24x32xf32>
    %55 = vector.extract_strided_slice %5 {offsets = [4, 0], sizes = [1, 32], strides = [1, 1]} : vector<9x32xf32> to vector<1x32xf32>
    %56 = vector.shape_cast %55 : vector<1x32xf32> to vector<32xf32>
    %57 = vector.shape_cast %56 : vector<32xf32> to vector<1x32xf32>
    %58 = vector.broadcast %57 : vector<1x32xf32> to vector<24x32xf32>
    %59 = arith.addf %54, %58 : vector<24x32xf32>
    %60 = arith.truncf %59 : vector<24x32xf32> to vector<24x32xbf16>
    %61 = vector.extract_strided_slice %46 {offsets = [0, 0], sizes = [12, 8], strides = [1, 1]} : vector<24x32xbf16> to vector<12x8xbf16>
    %62 = vector.extract_strided_slice %53 {offsets = [0, 0], sizes = [12, 8], strides = [1, 1]} : vector<24x32xbf16> to vector<12x8xbf16>
    %63 = vector.extract_strided_slice %60 {offsets = [0, 0], sizes = [12, 8], strides = [1, 1]} : vector<24x32xbf16> to vector<12x8xbf16>
    "tpu.trace_start"() <{level = 10 : i32, message = "qd,kd->qk"}> : () -> ()
    %cst_14 = arith.constant dense<0.000000e+00> : vector<12x12xf32>
    %64 = tpu.matmul %61, %62, %cst_14 {dimension_numbers = #tpu.dot_dimension_numbers<[1], [1], [0], [0], [0, 0, 1, 0], [], []>} : vector<12x8xbf16>, vector<12x8xbf16>, vector<12x12xf32> -> vector<12x12xf32>
    "tpu.trace_stop"() : () -> ()
    %cst_15 = arith.constant dense<0xFF800000> : vector<12xf32>
    %65 = vector.multi_reduction <maximumf>, %64, %cst_15 [1] : vector<12x12xf32> to vector<12xf32>
    %66 = vector.shape_cast %65 : vector<12xf32> to vector<12x1xf32>
    %67 = vector.broadcast %66 : vector<12x1xf32> to vector<12x12xf32>
    %68 = arith.subf %64, %67 : vector<12x12xf32>
    %69 = math.exp %68 : vector<12x12xf32>
    %cst_16 = arith.constant dense<0.000000e+00> : vector<12xf32>
    %70 = vector.multi_reduction <add>, %69, %cst_16 [1] : vector<12x12xf32> to vector<12xf32>
    %71 = vector.shape_cast %70 : vector<12xf32> to vector<12x1xf32>
    %72 = tpu.reciprocal %71 {approx = true} : vector<12x1xf32> -> vector<12x1xf32>
    %73 = vector.broadcast %72 : vector<12x1xf32> to vector<12x12xf32>
    %74 = arith.mulf %69, %73 : vector<12x12xf32>
    %75 = arith.truncf %74 : vector<12x12xf32> to vector<12x12xbf16>
    %cst_17 = arith.constant dense<0.000000e+00> : vector<12x8xf32>
    %76 = tpu.matmul %75, %63, %cst_17 {dimension_numbers = #tpu.dot_dimension_numbers<[1], [0], [0], [1], [0, 0, 1, 1], [], []>} : vector<12x12xbf16>, vector<12x8xbf16>, vector<12x8xf32> -> vector<12x8xf32>
    %c0_18 = arith.constant 0 : index
    %c0_19 = arith.constant 0 : index
    %77 = vector.load %arg14[%c0_18, %c0_19] : memref<24x32xf32, #tpu.memory_space<vmem>>, vector<12x8xf32>
    tpu.vector_store %arg14[%c0_18, %c0_19], %76 {strides = array<i32>} : memref<24x32xf32, #tpu.memory_space<vmem>>, vector<12x8xf32>,
    %78 = vector.extract_strided_slice %46 {offsets = [0, 8], sizes = [12, 8], strides = [1, 1]} : vector<24x32xbf16> to vector<12x8xbf16>
    %79 = vector.extract_strided_slice %53 {offsets = [0, 8], sizes = [12, 8], strides = [1, 1]} : vector<24x32xbf16> to vector<12x8xbf16>
    %80 = vector.extract_strided_slice %60 {offsets = [0, 8], sizes = [12, 8], strides = [1, 1]} : vector<24x32xbf16> to vector<12x8xbf16>
    "tpu.trace_start"() <{level = 10 : i32, message = "qd,kd->qk"}> : () -> ()
    %cst_20 = arith.constant dense<0.000000e+00> : vector<12x12xf32>
    %81 = tpu.matmul %78, %79, %cst_20 {dimension_numbers = #tpu.dot_dimension_numbers<[1], [1], [0], [0], [0, 0, 1, 0], [], []>} : vector<12x8xbf16>, vector<12x8xbf16>, vector<12x12xf32> -> vector<12x12xf32>
    "tpu.trace_stop"() : () -> ()
    %cst_21 = arith.constant dense<0xFF800000> : vector<12xf32>
    %82 = vector.multi_reduction <maximumf>, %81, %cst_21 [1] : vector<12x12xf32> to vector<12xf32>
    %83 = vector.shape_cast %82 : vector<12xf32> to vector<12x1xf32>
    %84 = vector.broadcast %83 : vector<12x1xf32> to vector<12x12xf32>
    %85 = arith.subf %81, %84 : vector<12x12xf32>
    %86 = math.exp %85 : vector<12x12xf32>
    %cst_22 = arith.constant dense<0.000000e+00> : vector<12xf32>
    %87 = vector.multi_reduction <add>, %86, %cst_22 [1] : vector<12x12xf32> to vector<12xf32>
    %88 = vector.shape_cast %87 : vector<12xf32> to vector<12x1xf32>
    %89 = tpu.reciprocal %88 {approx = true} : vector<12x1xf32> -> vector<12x1xf32>
    %90 = vector.broadcast %89 : vector<12x1xf32> to vector<12x12xf32>
    %91 = arith.mulf %86, %90 : vector<12x12xf32>
    %92 = arith.truncf %91 : vector<12x12xf32> to vector<12x12xbf16>
    %cst_23 = arith.constant dense<0.000000e+00> : vector<12x8xf32>
    %93 = tpu.matmul %92, %80, %cst_23 {dimension_numbers = #tpu.dot_dimension_numbers<[1], [0], [0], [1], [0, 0, 1, 1], [], []>} : vector<12x12xbf16>, vector<12x8xbf16>, vector<12x8xf32> -> vector<12x8xf32>
    %c0_24 = arith.constant 0 : index
    %c8 = arith.constant 8 : index
    %94 = vector.load %arg14[%c0_24, %c8] : memref<24x32xf32, #tpu.memory_space<vmem>>, vector<12x8xf32>
    tpu.vector_store %arg14[%c0_24, %c8], %93 {strides = array<i32>} : memref<24x32xf32, #tpu.memory_space<vmem>>, vector<12x8xf32>,
    %95 = vector.extract_strided_slice %46 {offsets = [0, 16], sizes = [12, 8], strides = [1, 1]} : vector<24x32xbf16> to vector<12x8xbf16>
    %96 = vector.extract_strided_slice %53 {offsets = [0, 16], sizes = [12, 8], strides = [1, 1]} : vector<24x32xbf16> to vector<12x8xbf16>
    %97 = vector.extract_strided_slice %60 {offsets = [0, 16], sizes = [12, 8], strides = [1, 1]} : vector<24x32xbf16> to vector<12x8xbf16>
    "tpu.trace_start"() <{level = 10 : i32, message = "qd,kd->qk"}> : () -> ()
    %cst_25 = arith.constant dense<0.000000e+00> : vector<12x12xf32>
    %98 = tpu.matmul %95, %96, %cst_25 {dimension_numbers = #tpu.dot_dimension_numbers<[1], [1], [0], [0], [0, 0, 1, 0], [], []>} : vector<12x8xbf16>, vector<12x8xbf16>, vector<12x12xf32> -> vector<12x12xf32>
    "tpu.trace_stop"() : () -> ()
    %cst_26 = arith.constant dense<0xFF800000> : vector<12xf32>
    %99 = vector.multi_reduction <maximumf>, %98, %cst_26 [1] : vector<12x12xf32> to vector<12xf32>
    %100 = vector.shape_cast %99 : vector<12xf32> to vector<12x1xf32>
    %101 = vector.broadcast %100 : vector<12x1xf32> to vector<12x12xf32>
    %102 = arith.subf %98, %101 : vector<12x12xf32>
    %103 = math.exp %102 : vector<12x12xf32>
    %cst_27 = arith.constant dense<0.000000e+00> : vector<12xf32>
    %104 = vector.multi_reduction <add>, %103, %cst_27 [1] : vector<12x12xf32> to vector<12xf32>
    %105 = vector.shape_cast %104 : vector<12xf32> to vector<12x1xf32>
    %106 = tpu.reciprocal %105 {approx = true} : vector<12x1xf32> -> vector<12x1xf32>
    %107 = vector.broadcast %106 : vector<12x1xf32> to vector<12x12xf32>
    %108 = arith.mulf %103, %107 : vector<12x12xf32>
    %109 = arith.truncf %108 : vector<12x12xf32> to vector<12x12xbf16>
    %cst_28 = arith.constant dense<0.000000e+00> : vector<12x8xf32>
    %110 = tpu.matmul %109, %97, %cst_28 {dimension_numbers = #tpu.dot_dimension_numbers<[1], [0], [0], [1], [0, 0, 1, 1], [], []>} : vector<12x12xbf16>, vector<12x8xbf16>, vector<12x8xf32> -> vector<12x8xf32>
    %c0_29 = arith.constant 0 : index
    %c16 = arith.constant 16 : index
    %111 = vector.load %arg14[%c0_29, %c16] : memref<24x32xf32, #tpu.memory_space<vmem>>, vector<12x8xf32>
    tpu.vector_store %arg14[%c0_29, %c16], %110 {strides = array<i32>} : memref<24x32xf32, #tpu.memory_space<vmem>>, vector<12x8xf32>,
    %112 = vector.extract_strided_slice %46 {offsets = [0, 24], sizes = [12, 8], strides = [1, 1]} : vector<24x32xbf16> to vector<12x8xbf16>
    %113 = vector.extract_strided_slice %53 {offsets = [0, 24], sizes = [12, 8], strides = [1, 1]} : vector<24x32xbf16> to vector<12x8xbf16>
    %114 = vector.extract_strided_slice %60 {offsets = [0, 24], sizes = [12, 8], strides = [1, 1]} : vector<24x32xbf16> to vector<12x8xbf16>
    "tpu.trace_start"() <{level = 10 : i32, message = "qd,kd->qk"}> : () -> ()
    %cst_30 = arith.constant dense<0.000000e+00> : vector<12x12xf32>
    %115 = tpu.matmul %112, %113, %cst_30 {dimension_numbers = #tpu.dot_dimension_numbers<[1], [1], [0], [0], [0, 0, 1, 0], [], []>} : vector<12x8xbf16>, vector<12x8xbf16>, vector<12x12xf32> -> vector<12x12xf32>
    "tpu.trace_stop"() : () -> ()
    %cst_31 = arith.constant dense<0xFF800000> : vector<12xf32>
    %116 = vector.multi_reduction <maximumf>, %115, %cst_31 [1] : vector<12x12xf32> to vector<12xf32>
    %117 = vector.shape_cast %116 : vector<12xf32> to vector<12x1xf32>
    %118 = vector.broadcast %117 : vector<12x1xf32> to vector<12x12xf32>
    %119 = arith.subf %115, %118 : vector<12x12xf32>
    %120 = math.exp %119 : vector<12x12xf32>
    %cst_32 = arith.constant dense<0.000000e+00> : vector<12xf32>
    %121 = vector.multi_reduction <add>, %120, %cst_32 [1] : vector<12x12xf32> to vector<12xf32>
    %122 = vector.shape_cast %121 : vector<12xf32> to vector<12x1xf32>
    %123 = tpu.reciprocal %122 {approx = true} : vector<12x1xf32> -> vector<12x1xf32>
    %124 = vector.broadcast %123 : vector<12x1xf32> to vector<12x12xf32>
    %125 = arith.mulf %120, %124 : vector<12x12xf32>
    %126 = arith.truncf %125 : vector<12x12xf32> to vector<12x12xbf16>
    %cst_33 = arith.constant dense<0.000000e+00> : vector<12x8xf32>
    %127 = tpu.matmul %126, %114, %cst_33 {dimension_numbers = #tpu.dot_dimension_numbers<[1], [0], [0], [1], [0, 0, 1, 1], [], []>} : vector<12x12xbf16>, vector<12x8xbf16>, vector<12x8xf32> -> vector<12x8xf32>
    %c0_34 = arith.constant 0 : index
    %c24 = arith.constant 24 : index
    %128 = vector.load %arg14[%c0_34, %c24] : memref<24x32xf32, #tpu.memory_space<vmem>>, vector<12x8xf32>
    tpu.vector_store %arg14[%c0_34, %c24], %127 {strides = array<i32>} : memref<24x32xf32, #tpu.memory_space<vmem>>, vector<12x8xf32>,
    %129 = vector.extract_strided_slice %46 {offsets = [12, 0], sizes = [12, 8], strides = [1, 1]} : vector<24x32xbf16> to vector<12x8xbf16>
    %130 = vector.extract_strided_slice %53 {offsets = [12, 0], sizes = [12, 8], strides = [1, 1]} : vector<24x32xbf16> to vector<12x8xbf16>
    %131 = vector.extract_strided_slice %60 {offsets = [12, 0], sizes = [12, 8], strides = [1, 1]} : vector<24x32xbf16> to vector<12x8xbf16>
    "tpu.trace_start"() <{level = 10 : i32, message = "qd,kd->qk"}> : () -> ()
    %cst_35 = arith.constant dense<0.000000e+00> : vector<12x12xf32>
    %132 = tpu.matmul %129, %130, %cst_35 {dimension_numbers = #tpu.dot_dimension_numbers<[1], [1], [0], [0], [0, 0, 1, 0], [], []>} : vector<12x8xbf16>, vector<12x8xbf16>, vector<12x12xf32> -> vector<12x12xf32>
    "tpu.trace_stop"() : () -> ()
    %cst_36 = arith.constant dense<0xFF800000> : vector<12xf32>
    %133 = vector.multi_reduction <maximumf>, %132, %cst_36 [1] : vector<12x12xf32> to vector<12xf32>
    %134 = vector.shape_cast %133 : vector<12xf32> to vector<12x1xf32>
    %135 = vector.broadcast %134 : vector<12x1xf32> to vector<12x12xf32>
    %136 = arith.subf %132, %135 : vector<12x12xf32>
    %137 = math.exp %136 : vector<12x12xf32>
    %cst_37 = arith.constant dense<0.000000e+00> : vector<12xf32>
    %138 = vector.multi_reduction <add>, %137, %cst_37 [1] : vector<12x12xf32> to vector<12xf32>
    %139 = vector.shape_cast %138 : vector<12xf32> to vector<12x1xf32>
    %140 = tpu.reciprocal %139 {approx = true} : vector<12x1xf32> -> vector<12x1xf32>
    %141 = vector.broadcast %140 : vector<12x1xf32> to vector<12x12xf32>
    %142 = arith.mulf %137, %141 : vector<12x12xf32>
    %143 = arith.truncf %142 : vector<12x12xf32> to vector<12x12xbf16>
    %cst_38 = arith.constant dense<0.000000e+00> : vector<12x8xf32>
    %144 = tpu.matmul %143, %131, %cst_38 {dimension_numbers = #tpu.dot_dimension_numbers<[1], [0], [0], [1], [0, 0, 1, 1], [], []>} : vector<12x12xbf16>, vector<12x8xbf16>, vector<12x8xf32> -> vector<12x8xf32>
    %c12 = arith.constant 12 : index
    %c0_39 = arith.constant 0 : index
    %145 = vector.load %arg14[%c12, %c0_39] : memref<24x32xf32, #tpu.memory_space<vmem>>, vector<12x8xf32>
    tpu.vector_store %arg14[%c12, %c0_39], %144 {strides = array<i32>} : memref<24x32xf32, #tpu.memory_space<vmem>>, vector<12x8xf32>,
    %146 = vector.extract_strided_slice %46 {offsets = [12, 8], sizes = [12, 8], strides = [1, 1]} : vector<24x32xbf16> to vector<12x8xbf16>
    %147 = vector.extract_strided_slice %53 {offsets = [12, 8], sizes = [12, 8], strides = [1, 1]} : vector<24x32xbf16> to vector<12x8xbf16>
    %148 = vector.extract_strided_slice %60 {offsets = [12, 8], sizes = [12, 8], strides = [1, 1]} : vector<24x32xbf16> to vector<12x8xbf16>
    "tpu.trace_start"() <{level = 10 : i32, message = "qd,kd->qk"}> : () -> ()
    %cst_40 = arith.constant dense<0.000000e+00> : vector<12x12xf32>
    %149 = tpu.matmul %146, %147, %cst_40 {dimension_numbers = #tpu.dot_dimension_numbers<[1], [1], [0], [0], [0, 0, 1, 0], [], []>} : vector<12x8xbf16>, vector<12x8xbf16>, vector<12x12xf32> -> vector<12x12xf32>
    "tpu.trace_stop"() : () -> ()
    %cst_41 = arith.constant dense<0xFF800000> : vector<12xf32>
    %150 = vector.multi_reduction <maximumf>, %149, %cst_41 [1] : vector<12x12xf32> to vector<12xf32>
    %151 = vector.shape_cast %150 : vector<12xf32> to vector<12x1xf32>
    %152 = vector.broadcast %151 : vector<12x1xf32> to vector<12x12xf32>
    %153 = arith.subf %149, %152 : vector<12x12xf32>
    %154 = math.exp %153 : vector<12x12xf32>
    %cst_42 = arith.constant dense<0.000000e+00> : vector<12xf32>
    %155 = vector.multi_reduction <add>, %154, %cst_42 [1] : vector<12x12xf32> to vector<12xf32>
    %156 = vector.shape_cast %155 : vector<12xf32> to vector<12x1xf32>
    %157 = tpu.reciprocal %156 {approx = true} : vector<12x1xf32> -> vector<12x1xf32>
    %158 = vector.broadcast %157 : vector<12x1xf32> to vector<12x12xf32>
    %159 = arith.mulf %154, %158 : vector<12x12xf32>
    %160 = arith.truncf %159 : vector<12x12xf32> to vector<12x12xbf16>
    %cst_43 = arith.constant dense<0.000000e+00> : vector<12x8xf32>
    %161 = tpu.matmul %160, %148, %cst_43 {dimension_numbers = #tpu.dot_dimension_numbers<[1], [0], [0], [1], [0, 0, 1, 1], [], []>} : vector<12x12xbf16>, vector<12x8xbf16>, vector<12x8xf32> -> vector<12x8xf32>
    %c12_44 = arith.constant 12 : index
    %c8_45 = arith.constant 8 : index
    %162 = vector.load %arg14[%c12_44, %c8_45] : memref<24x32xf32, #tpu.memory_space<vmem>>, vector<12x8xf32>
    tpu.vector_store %arg14[%c12_44, %c8_45], %161 {strides = array<i32>} : memref<24x32xf32, #tpu.memory_space<vmem>>, vector<12x8xf32>,
    %163 = vector.extract_strided_slice %46 {offsets = [12, 16], sizes = [12, 8], strides = [1, 1]} : vector<24x32xbf16> to vector<12x8xbf16>
    %164 = vector.extract_strided_slice %53 {offsets = [12, 16], sizes = [12, 8], strides = [1, 1]} : vector<24x32xbf16> to vector<12x8xbf16>
    %165 = vector.extract_strided_slice %60 {offsets = [12, 16], sizes = [12, 8], strides = [1, 1]} : vector<24x32xbf16> to vector<12x8xbf16>
    "tpu.trace_start"() <{level = 10 : i32, message = "qd,kd->qk"}> : () -> ()
    %cst_46 = arith.constant dense<0.000000e+00> : vector<12x12xf32>
    %166 = tpu.matmul %163, %164, %cst_46 {dimension_numbers = #tpu.dot_dimension_numbers<[1], [1], [0], [0], [0, 0, 1, 0], [], []>} : vector<12x8xbf16>, vector<12x8xbf16>, vector<12x12xf32> -> vector<12x12xf32>
    "tpu.trace_stop"() : () -> ()
    %cst_47 = arith.constant dense<0xFF800000> : vector<12xf32>
    %167 = vector.multi_reduction <maximumf>, %166, %cst_47 [1] : vector<12x12xf32> to vector<12xf32>
    %168 = vector.shape_cast %167 : vector<12xf32> to vector<12x1xf32>
    %169 = vector.broadcast %168 : vector<12x1xf32> to vector<12x12xf32>
    %170 = arith.subf %166, %169 : vector<12x12xf32>
    %171 = math.exp %170 : vector<12x12xf32>
    %cst_48 = arith.constant dense<0.000000e+00> : vector<12xf32>
    %172 = vector.multi_reduction <add>, %171, %cst_48 [1] : vector<12x12xf32> to vector<12xf32>
    %173 = vector.shape_cast %172 : vector<12xf32> to vector<12x1xf32>
    %174 = tpu.reciprocal %173 {approx = true} : vector<12x1xf32> -> vector<12x1xf32>
    %175 = vector.broadcast %174 : vector<12x1xf32> to vector<12x12xf32>
    %176 = arith.mulf %171, %175 : vector<12x12xf32>
    %177 = arith.truncf %176 : vector<12x12xf32> to vector<12x12xbf16>
    %cst_49 = arith.constant dense<0.000000e+00> : vector<12x8xf32>
    %178 = tpu.matmul %177, %165, %cst_49 {dimension_numbers = #tpu.dot_dimension_numbers<[1], [0], [0], [1], [0, 0, 1, 1], [], []>} : vector<12x12xbf16>, vector<12x8xbf16>, vector<12x8xf32> -> vector<12x8xf32>
    %c12_50 = arith.constant 12 : index
    %c16_51 = arith.constant 16 : index
    %179 = vector.load %arg14[%c12_50, %c16_51] : memref<24x32xf32, #tpu.memory_space<vmem>>, vector<12x8xf32>
    tpu.vector_store %arg14[%c12_50, %c16_51], %178 {strides = array<i32>} : memref<24x32xf32, #tpu.memory_space<vmem>>, vector<12x8xf32>,
    %180 = vector.extract_strided_slice %46 {offsets = [12, 24], sizes = [12, 8], strides = [1, 1]} : vector<24x32xbf16> to vector<12x8xbf16>
    %181 = vector.extract_strided_slice %53 {offsets = [12, 24], sizes = [12, 8], strides = [1, 1]} : vector<24x32xbf16> to vector<12x8xbf16>
    %182 = vector.extract_strided_slice %60 {offsets = [12, 24], sizes = [12, 8], strides = [1, 1]} : vector<24x32xbf16> to vector<12x8xbf16>
    "tpu.trace_start"() <{level = 10 : i32, message = "qd,kd->qk"}> : () -> ()
    %cst_52 = arith.constant dense<0.000000e+00> : vector<12x12xf32>
    %183 = tpu.matmul %180, %181, %cst_52 {dimension_numbers = #tpu.dot_dimension_numbers<[1], [1], [0], [0], [0, 0, 1, 0], [], []>} : vector<12x8xbf16>, vector<12x8xbf16>, vector<12x12xf32> -> vector<12x12xf32>
    "tpu.trace_stop"() : () -> ()
    %cst_53 = arith.constant dense<0xFF800000> : vector<12xf32>
    %184 = vector.multi_reduction <maximumf>, %183, %cst_53 [1] : vector<12x12xf32> to vector<12xf32>
    %185 = vector.shape_cast %184 : vector<12xf32> to vector<12x1xf32>
    %186 = vector.broadcast %185 : vector<12x1xf32> to vector<12x12xf32>
    %187 = arith.subf %183, %186 : vector<12x12xf32>
    %188 = math.exp %187 : vector<12x12xf32>
    %cst_54 = arith.constant dense<0.000000e+00> : vector<12xf32>
    %189 = vector.multi_reduction <add>, %188, %cst_54 [1] : vector<12x12xf32> to vector<12xf32>
    %190 = vector.shape_cast %189 : vector<12xf32> to vector<12x1xf32>
    %191 = tpu.reciprocal %190 {approx = true} : vector<12x1xf32> -> vector<12x1xf32>
    %192 = vector.broadcast %191 : vector<12x1xf32> to vector<12x12xf32>
    %193 = arith.mulf %188, %192 : vector<12x12xf32>
    %194 = arith.truncf %193 : vector<12x12xf32> to vector<12x12xbf16>
    %cst_55 = arith.constant dense<0.000000e+00> : vector<12x8xf32>
    %195 = tpu.matmul %194, %182, %cst_55 {dimension_numbers = #tpu.dot_dimension_numbers<[1], [0], [0], [1], [0, 0, 1, 1], [], []>} : vector<12x12xbf16>, vector<12x8xbf16>, vector<12x8xf32> -> vector<12x8xf32>
    %c12_56 = arith.constant 12 : index
    %c24_57 = arith.constant 24 : index
    %196 = vector.load %arg14[%c12_56, %c24_57] : memref<24x32xf32, #tpu.memory_space<vmem>>, vector<12x8xf32>
    tpu.vector_store %arg14[%c12_56, %c24_57], %195 {strides = array<i32>} : memref<24x32xf32, #tpu.memory_space<vmem>>, vector<12x8xf32>,
    %c0_58 = arith.constant 0 : index
    %c0_59 = arith.constant 0 : index
    %197 = vector.load %arg14[%c0_58, %c0_59] : memref<24x32xf32, #tpu.memory_space<vmem>>, vector<24x32xf32>
    %198 = arith.truncf %197 : vector<24x32xf32> to vector<24x32xbf16>
    %c0_60 = arith.constant 0 : index
    %c0_61 = arith.constant 0 : index
    %c0_62 = arith.constant 0 : index
    %199 = vector.load %arg8[%c0_60, %c0_61, %c0_62] : memref<1x32x32xbf16, #tpu.memory_space<vmem>>, vector<1x32x32xbf16>
    %200 = vector.shape_cast %199 : vector<1x32x32xbf16> to vector<32x32xbf16>
    %cst_63 = arith.constant dense<0.000000e+00> : vector<24x32xf32>
    %201 = tpu.matmul %198, %200, %cst_63 {dimension_numbers = #tpu.dot_dimension_numbers<[1], [0], [0], [1], [0, 0, 1, 1], [], []>} : vector<24x32xbf16>, vector<32x32xbf16>, vector<24x32xf32> -> vector<24x32xf32>
    %202 = vector.extract_strided_slice %5 {offsets = [5, 0], sizes = [1, 32], strides = [1, 1]} : vector<9x32xf32> to vector<1x32xf32>
    %203 = vector.shape_cast %202 : vector<1x32xf32> to vector<32xf32>
    %204 = vector.shape_cast %203 : vector<32xf32> to vector<1x32xf32>
    %205 = vector.broadcast %204 : vector<1x32xf32> to vector<24x32xf32>
    %206 = arith.addf %201, %205 : vector<24x32xf32>
    %207 = arith.addf %3, %206 : vector<24x32xf32>
    %208 = vector.extract_strided_slice %5 {offsets = [6, 0], sizes = [1, 32], strides = [1, 1]} : vector<9x32xf32> to vector<1x32xf32>
    %209 = vector.shape_cast %208 : vector<1x32xf32> to vector<32xf32>
    %210 = vector.extract_strided_slice %5 {offsets = [7, 0], sizes = [1, 32], strides = [1, 1]} : vector<9x32xf32> to vector<1x32xf32>
    %211 = vector.shape_cast %210 : vector<1x32xf32> to vector<32xf32>
    %cst_64 = arith.constant dense<0.000000e+00> : vector<24xf32>
    %212 = vector.multi_reduction <add>, %207, %cst_64 [1] : vector<24x32xf32> to vector<24xf32>
    %213 = vector.shape_cast %212 : vector<24xf32> to vector<24x1xf32>
    %cst_65 = arith.constant 3.200000e+01 : f32
    %214 = vector.broadcast %cst_65 : f32 to vector<24x1xf32>
    %215 = arith.divf %213, %214 : vector<24x1xf32>
    %216 = vector.broadcast %215 : vector<24x1xf32> to vector<24x32xf32>
    %217 = arith.subf %207, %216 : vector<24x32xf32>
    %218 = arith.mulf %217, %217 : vector<24x32xf32>
    %cst_66 = arith.constant dense<0.000000e+00> : vector<24xf32>
    %219 = vector.multi_reduction <add>, %218, %cst_66 [1] : vector<24x32xf32> to vector<24xf32>
    %220 = vector.shape_cast %219 : vector<24xf32> to vector<24x1xf32>
    %cst_67 = arith.constant 3.200000e+01 : f32
    %221 = vector.broadcast %cst_67 : f32 to vector<24x1xf32>
    %222 = arith.divf %220, %221 : vector<24x1xf32>
    %223 = vector.broadcast %215 : vector<24x1xf32> to vector<24x32xf32>
    %224 = arith.subf %207, %223 : vector<24x32xf32>
    %cst_68 = arith.constant 9.99999974E-6 : f32
    %225 = vector.broadcast %cst_68 : f32 to vector<24x1xf32>
    %226 = arith.addf %222, %225 : vector<24x1xf32>
    %227 = math.rsqrt %226 : vector<24x1xf32>
    %228 = vector.broadcast %227 : vector<24x1xf32> to vector<24x32xf32>
    %229 = arith.mulf %224, %228 : vector<24x32xf32>
    %230 = vector.shape_cast %209 : vector<32xf32> to vector<1x32xf32>
    %231 = vector.broadcast %230 : vector<1x32xf32> to vector<24x32xf32>
    %232 = arith.mulf %229, %231 : vector<24x32xf32>
    %233 = vector.shape_cast %211 : vector<32xf32> to vector<1x32xf32>
    %234 = vector.broadcast %233 : vector<1x32xf32> to vector<24x32xf32>
    %235 = arith.addf %232, %234 : vector<24x32xf32>
    %236 = arith.truncf %235 : vector<24x32xf32> to vector<24x32xbf16>
    %c0_69 = arith.constant 0 : index
    %c0_70 = arith.constant 0 : index
    %c0_71 = arith.constant 0 : index
    %237 = vector.load %arg9[%c0_69, %c0_70, %c0_71] : memref<1x32x128xbf16, #tpu.memory_space<vmem>>, vector<1x32x128xbf16>
    %238 = vector.shape_cast %237 : vector<1x32x128xbf16> to vector<32x128xbf16>
    %cst_72 = arith.constant dense<0.000000e+00> : vector<24x128xf32>
    %239 = tpu.matmul %236, %238, %cst_72 {dimension_numbers = #tpu.dot_dimension_numbers<[1], [0], [0], [1], [0, 0, 1, 1], [], []>} : vector<24x32xbf16>, vector<32x128xbf16>, vector<24x128xf32> -> vector<24x128xf32>
    %c0_73 = arith.constant 0 : index
    %c0_74 = arith.constant 0 : index
    %c0_75 = arith.constant 0 : index
    %240 = vector.load %arg6[%c0_73, %c0_74, %c0_75] : memref<1x1x128xf32, #tpu.memory_space<vmem>>, vector<1x1x128xf32>
    %241 = vector.shape_cast %240 : vector<1x1x128xf32> to vector<128xf32>
    %242 = vector.shape_cast %241 : vector<128xf32> to vector<1x128xf32>
    %243 = vector.broadcast %242 : vector<1x128xf32> to vector<24x128xf32>
    %244 = arith.addf %239, %243 : vector<24x128xf32>
    %cst_76 = arith.constant 1.702000e+00 : f32
    %245 = vector.broadcast %cst_76 : f32 to vector<24x128xf32>
    %246 = arith.mulf %245, %244 : vector<24x128xf32>
    %247 = arith.negf %246 : vector<24x128xf32>
    %248 = math.exp %247 : vector<24x128xf32>
    %cst_77 = arith.constant 1.000000e+00 : f32
    %249 = vector.broadcast %cst_77 : f32 to vector<24x128xf32>
    %250 = arith.addf %249, %248 : vector<24x128xf32>
    %251 = arith.divf %249, %250 : vector<24x128xf32>
    %252 = arith.mulf %244, %251 : vector<24x128xf32>
    %253 = arith.truncf %252 : vector<24x128xf32> to vector<24x128xbf16>
    %c0_78 = arith.constant 0 : index
    %c0_79 = arith.constant 0 : index
    %c0_80 = arith.constant 0 : index
    %254 = vector.load %arg10[%c0_78, %c0_79, %c0_80] : memref<1x128x32xbf16, #tpu.memory_space<vmem>>, vector<1x128x32xbf16>
    %255 = vector.shape_cast %254 : vector<1x128x32xbf16> to vector<128x32xbf16>
    %cst_81 = arith.constant dense<0.000000e+00> : vector<24x32xf32>
    %256 = tpu.matmul %253, %255, %cst_81 {dimension_numbers = #tpu.dot_dimension_numbers<[1], [0], [0], [1], [0, 0, 1, 1], [], []>} : vector<24x128xbf16>, vector<128x32xbf16>, vector<24x32xf32> -> vector<24x32xf32>
    %257 = vector.extract_strided_slice %5 {offsets = [8, 0], sizes = [1, 32], strides = [1, 1]} : vector<9x32xf32> to vector<1x32xf32>
    %258 = vector.shape_cast %257 : vector<1x32xf32> to vector<32xf32>
    %259 = vector.shape_cast %258 : vector<32xf32> to vector<1x32xf32>
    %260 = vector.broadcast %259 : vector<1x32xf32> to vector<24x32xf32>
    %261 = arith.addf %256, %260 : vector<24x32xf32>
    %262 = arith.addf %207, %261 : vector<24x32xf32>
    %c0_82 = arith.constant 0 : index
    %c0_83 = arith.constant 0 : index
    %263 = vector.load %arg13[%c0_82, %c0_83] : memref<24x32xf32, #tpu.memory_space<vmem>>, vector<24x32xf32>
    tpu.vector_store %arg13[%c0_82, %c0_83], %262 {strides = array<i32>} : memref<24x32xf32, #tpu.memory_space<vmem>>, vector<24x32xf32>,
    %c1_i32 = arith.constant 1 : i32
    %264 = arith.cmpi eq, %arg1, %c1_i32 : i32
    %265 = arith.extui %264 : i1 to i32
    %c0_i32_84 = arith.constant 0 : i32
    %266 = arith.cmpi ne, %265, %c0_i32_84 : i32
    scf.if %266 {
      %c2 = arith.constant 2 : index
      %c0_85 = arith.constant 0 : index
      %267 = vector.load %arg4[%c2, %c0_85] : memref<4x32xf32, #tpu.memory_space<vmem>>, vector<1x32xf32>
      %268 = vector.shape_cast %267 : vector<1x32xf32> to vector<32xf32>
      %c3 = arith.constant 3 : index
      %c0_86 = arith.constant 0 : index
      %269 = vector.load %arg4[%c3, %c0_86] : memref<4x32xf32, #tpu.memory_space<vmem>>, vector<1x32xf32>
      %270 = vector.shape_cast %269 : vector<1x32xf32> to vector<32xf32>
      %271 = vector.extract_strided_slice %262 {offsets = [0, 0], sizes = [4, 32], strides = [1, 1]} : vector<24x32xf32> to vector<4x32xf32>
      %cst_87 = arith.constant dense<0.000000e+00> : vector<4xf32>
      %272 = vector.multi_reduction <add>, %271, %cst_87 [1] : vector<4x32xf32> to vector<4xf32>
      %273 = vector.shape_cast %272 : vector<4xf32> to vector<4x1xf32>
      %cst_88 = arith.constant 3.200000e+01 : f32
      %274 = vector.broadcast %cst_88 : f32 to vector<4x1xf32>
      %275 = arith.divf %273, %274 : vector<4x1xf32>
      %276 = vector.broadcast %275 : vector<4x1xf32> to vector<4x32xf32>
      %277 = arith.subf %271, %276 : vector<4x32xf32>
      %278 = arith.mulf %277, %277 : vector<4x32xf32>
      %cst_89 = arith.constant dense<0.000000e+00> : vector<4xf32>
      %279 = vector.multi_reduction <add>, %278, %cst_89 [1] : vector<4x32xf32> to vector<4xf32>
      %280 = vector.shape_cast %279 : vector<4xf32> to vector<4x1xf32>
      %cst_90 = arith.constant 3.200000e+01 : f32
      %281 = vector.broadcast %cst_90 : f32 to vector<4x1xf32>
      %282 = arith.divf %280, %281 : vector<4x1xf32>
      %283 = vector.broadcast %275 : vector<4x1xf32> to vector<4x32xf32>
      %284 = arith.subf %271, %283 : vector<4x32xf32>
      %cst_91 = arith.constant 9.99999974E-6 : f32
      %285 = vector.broadcast %cst_91 : f32 to vector<4x1xf32>
      %286 = arith.addf %282, %285 : vector<4x1xf32>
      %287 = math.rsqrt %286 : vector<4x1xf32>
      %288 = vector.broadcast %287 : vector<4x1xf32> to vector<4x32xf32>
      %289 = arith.mulf %284, %288 : vector<4x32xf32>
      %290 = vector.shape_cast %268 : vector<32xf32> to vector<1x32xf32>
      %291 = vector.broadcast %290 : vector<1x32xf32> to vector<4x32xf32>
      %292 = arith.mulf %289, %291 : vector<4x32xf32>
      %293 = vector.shape_cast %270 : vector<32xf32> to vector<1x32xf32>
      %294 = vector.broadcast %293 : vector<1x32xf32> to vector<4x32xf32>
      %295 = arith.addf %292, %294 : vector<4x32xf32>
      %296 = arith.truncf %295 : vector<4x32xf32> to vector<4x32xbf16>
      %c0_92 = arith.constant 0 : index
      %c0_93 = arith.constant 0 : index
      %297 = vector.load %arg11[%c0_92, %c0_93] : memref<32x32xbf16, #tpu.memory_space<vmem>>, vector<32x32xbf16>
      %cst_94 = arith.constant dense<0.000000e+00> : vector<4x32xf32>
      %298 = tpu.matmul %296, %297, %cst_94 {dimension_numbers = #tpu.dot_dimension_numbers<[1], [0], [0], [1], [0, 0, 1, 1], [], []>} : vector<4x32xbf16>, vector<32x32xbf16>, vector<4x32xf32> -> vector<4x32xf32>
      %c0_95 = arith.constant 0 : index
      %c0_96 = arith.constant 0 : index
      %c0_97 = arith.constant 0 : index
      %299 = vector.load %arg12[%c0_95, %c0_96, %c0_97] : memref<2x4x32xf32, #tpu.memory_space<vmem>>, vector<1x4x32xf32>
      %300 = vector.shape_cast %299 : vector<1x4x32xf32> to vector<4x32xf32>
      %301 = vector.shape_cast %298 : vector<4x32xf32> to vector<1x4x32xf32>
      tpu.vector_store %arg12[%c0_95, %c0_96, %c0_97], %301 {strides = array<i32>} : memref<2x4x32xf32, #tpu.memory_space<vmem>>, vector<1x4x32xf32>,
      %302 = vector.extract_strided_slice %262 {offsets = [12, 0], sizes = [4, 32], strides = [1, 1]} : vector<24x32xf32> to vector<4x32xf32>
      %cst_98 = arith.constant dense<0.000000e+00> : vector<4xf32>
      %303 = vector.multi_reduction <add>, %302, %cst_98 [1] : vector<4x32xf32> to vector<4xf32>
      %304 = vector.shape_cast %303 : vector<4xf32> to vector<4x1xf32>
      %cst_99 = arith.constant 3.200000e+01 : f32
      %305 = vector.broadcast %cst_99 : f32 to vector<4x1xf32>
      %306 = arith.divf %304, %305 : vector<4x1xf32>
      %307 = vector.broadcast %306 : vector<4x1xf32> to vector<4x32xf32>
      %308 = arith.subf %302, %307 : vector<4x32xf32>
      %309 = arith.mulf %308, %308 : vector<4x32xf32>
      %cst_100 = arith.constant dense<0.000000e+00> : vector<4xf32>
      %310 = vector.multi_reduction <add>, %309, %cst_100 [1] : vector<4x32xf32> to vector<4xf32>
      %311 = vector.shape_cast %310 : vector<4xf32> to vector<4x1xf32>
      %cst_101 = arith.constant 3.200000e+01 : f32
      %312 = vector.broadcast %cst_101 : f32 to vector<4x1xf32>
      %313 = arith.divf %311, %312 : vector<4x1xf32>
      %314 = vector.broadcast %306 : vector<4x1xf32> to vector<4x32xf32>
      %315 = arith.subf %302, %314 : vector<4x32xf32>
      %cst_102 = arith.constant 9.99999974E-6 : f32
      %316 = vector.broadcast %cst_102 : f32 to vector<4x1xf32>
      %317 = arith.addf %313, %316 : vector<4x1xf32>
      %318 = math.rsqrt %317 : vector<4x1xf32>
      %319 = vector.broadcast %318 : vector<4x1xf32> to vector<4x32xf32>
      %320 = arith.mulf %315, %319 : vector<4x32xf32>
      %321 = vector.shape_cast %268 : vector<32xf32> to vector<1x32xf32>
      %322 = vector.broadcast %321 : vector<1x32xf32> to vector<4x32xf32>
      %323 = arith.mulf %320, %322 : vector<4x32xf32>
      %324 = vector.shape_cast %270 : vector<32xf32> to vector<1x32xf32>
      %325 = vector.broadcast %324 : vector<1x32xf32> to vector<4x32xf32>
      %326 = arith.addf %323, %325 : vector<4x32xf32>
      %327 = arith.truncf %326 : vector<4x32xf32> to vector<4x32xbf16>
      %c0_103 = arith.constant 0 : index
      %c0_104 = arith.constant 0 : index
      %328 = vector.load %arg11[%c0_103, %c0_104] : memref<32x32xbf16, #tpu.memory_space<vmem>>, vector<32x32xbf16>
      %cst_105 = arith.constant dense<0.000000e+00> : vector<4x32xf32>
      %329 = tpu.matmul %327, %328, %cst_105 {dimension_numbers = #tpu.dot_dimension_numbers<[1], [0], [0], [1], [0, 0, 1, 1], [], []>} : vector<4x32xbf16>, vector<32x32xbf16>, vector<4x32xf32> -> vector<4x32xf32>
      %c1 = arith.constant 1 : index
      %c0_106 = arith.constant 0 : index
      %c0_107 = arith.constant 0 : index
      %330 = vector.load %arg12[%c1, %c0_106, %c0_107] : memref<2x4x32xf32, #tpu.memory_space<vmem>>, vector<1x4x32xf32>
      %331 = vector.shape_cast %330 : vector<1x4x32xf32> to vector<4x32xf32>
      %332 = vector.shape_cast %329 : vector<4x32xf32> to vector<1x4x32xf32>
      tpu.vector_store %arg12[%c1, %c0_106, %c0_107], %332 {strides = array<i32>} : memref<2x4x32xf32, #tpu.memory_space<vmem>>, vector<1x4x32xf32>,
    } else {
    }
    return
  }
  func.func @transform_0(%arg0: i32, %arg1: i32) -> (i32, i32, i32) {
    %c0_i32 = arith.constant 0 : i32
    %c0_i32_0 = arith.constant 0 : i32
    %c0_i32_1 = arith.constant 0 : i32
    %c0_i32_2 = arith.constant 0 : i32
    return %c0_i32, %c0_i32_0, %c0_i32_1 : i32, i32, i32
  }
  func.func @transform_1(%arg0: i32, %arg1: i32) -> (i32, i32, i32) {
    %c0_i32 = arith.constant 0 : i32
    %c0_i32_0 = arith.constant 0 : i32
    %c0_i32_1 = arith.constant 0 : i32
    return %arg0, %c0_i32, %c0_i32_0 : i32, i32, i32
  }
  func.func @transform_2(%arg0: i32, %arg1: i32) -> (i32, i32) {
    %c0_i32 = arith.constant 0 : i32
    %c0_i32_0 = arith.constant 0 : i32
    %c0_i32_1 = arith.constant 0 : i32
    return %c0_i32, %c0_i32_0 : i32, i32
  }
  func.func @transform_3(%arg0: i32, %arg1: i32) -> (i32, i32, i32) {
    %c0_i32 = arith.constant 0 : i32
    %c0_i32_0 = arith.constant 0 : i32
    %c0_i32_1 = arith.constant 0 : i32
    return %arg1, %c0_i32, %c0_i32_0 : i32, i32, i32
  }
  func.func @transform_4(%arg0: i32, %arg1: i32) -> (i32, i32, i32) {
    %c0_i32 = arith.constant 0 : i32
    %c0_i32_0 = arith.constant 0 : i32
    %c0_i32_1 = arith.constant 0 : i32
    return %arg1, %c0_i32, %c0_i32_0 : i32, i32, i32
  }
  func.func @transform_5(%arg0: i32, %arg1: i32) -> (i32, i32, i32) {
    %c0_i32 = arith.constant 0 : i32
    %c0_i32_0 = arith.constant 0 : i32
    %c0_i32_1 = arith.constant 0 : i32
    return %arg1, %c0_i32, %c0_i32_0 : i32, i32, i32
  }
  func.func @transform_6(%arg0: i32, %arg1: i32) -> (i32, i32, i32) {
    %c0_i32 = arith.constant 0 : i32
    %c0_i32_0 = arith.constant 0 : i32
    %c0_i32_1 = arith.constant 0 : i32
    return %arg1, %c0_i32, %c0_i32_0 : i32, i32, i32
  }
  func.func @transform_7(%arg0: i32, %arg1: i32) -> (i32, i32, i32) {
    %c0_i32 = arith.constant 0 : i32
    %c0_i32_0 = arith.constant 0 : i32
    %c0_i32_1 = arith.constant 0 : i32
    return %arg1, %c0_i32, %c0_i32_0 : i32, i32, i32
  }
  func.func @transform_8(%arg0: i32, %arg1: i32) -> (i32, i32, i32) {
    %c0_i32 = arith.constant 0 : i32
    %c0_i32_0 = arith.constant 0 : i32
    %c0_i32_1 = arith.constant 0 : i32
    return %arg1, %c0_i32, %c0_i32_0 : i32, i32, i32
  }
  func.func @transform_9(%arg0: i32, %arg1: i32) -> (i32, i32) {
    %c0_i32 = arith.constant 0 : i32
    %c0_i32_0 = arith.constant 0 : i32
    %c0_i32_1 = arith.constant 0 : i32
    return %c0_i32, %c0_i32_0 : i32, i32
  }
  func.func @transform_10(%arg0: i32, %arg1: i32) -> (i32, i32, i32) {
    %c0_i32 = arith.constant 0 : i32
    %c0_i32_0 = arith.constant 0 : i32
    %c0_i32_1 = arith.constant 0 : i32
    return %arg0, %c0_i32, %c0_i32_0 : i32, i32, i32
  }
}

</mosaic_0001>

<bundles_post_ra>
// kernel: tpu_custom_call.1
= control target key start
LH: loop header
LB: loop body
LE: loop exit
PB: predicated region body
PF: predicated region fallthrough
CT: control target
= control target key end

     0   :  { %15 = vsyncpa [#allocation5], 0  ;;  %s2415_s13 = smov 0   ;;  %s2417_s14 = smov 0   ;;  %s2896_s0 = inlined_call_operand.vmem [shape: bf16[1,4,32], index: 0, kind: input, shape index: {}]   ;;  %s2897_s1 = inlined_call_operand.vmem [shape: bf16[2,8,32], index: 1, kind: input, shape index: {}]   ;;  %s2898_s2 = inlined_call_operand.vmem [shape: f32[4,32], index: 2, kind: input, shape index: {}]   ;;  %s2899_s3 = inlined_call_operand.vmem [shape: f32[2,9,32], index: 3, kind: input, shape index: {}]   ;;  %s2900_s4 = inlined_call_operand.vmem [shape: f32[2,1,128], index: 4, kind: input, shape index: {}]   ;;  %s2901_s5 = inlined_call_operand.vmem [shape: bf16[2,32,96], index: 5, kind: input, shape index: {}]   ;;  %s2902_s6 = inlined_call_operand.vmem [shape: bf16[2,32,32], index: 6, kind: input, shape index: {}]   ;;  %s2903_s7 = inlined_call_operand.vmem [shape: bf16[2,32,128], index: 7, kind: input, shape index: {}]   ;;  %s2904_s8 = inlined_call_operand.vmem [shape: bf16[2,128,32], index: 8, kind: input, shape index: {}]   ;;  %s2905_s9 = inlined_call_operand.vmem [shape: bf16[32,32], index: 9, kind: input, shape index: {}]   ;;  %s2906_s10 = inlined_call_operand.hbm [shape: f32[2,4,32], index: 10, kind: output, shape index: {}]  }
   0x1   :  { %s2419_s15 = smov 0  }
   0x2 LB: > { %s30_s17 = sadd.s32 1, %s2335_s14  ;;  %p1984_p1 = scmp.ge.s32.totalorder %s2339_s15, 1  ;;  %s2339_s15 = sphi %s2419_s15, %s21_s15   ;;  %s2335_s14 = sphi %s2417_s14, %s2910_s14   ;;  %s2331_s13 = sphi %s2415_s13, %s2909_s13  }
   0x3   : > { %p31_p0 = scmp.ge.s32.totalorder %s30_s17, 2  ;;  %p384_p2 = scmp.lt.s32.totalorder %s2339_s15, 3 }
   0x5   : > { %s2912_s17 = smov (%p31_p0, %s30_s17), 0  ;;  %p385_p3 = pnand %p1984_p1, %p384_p2 }
   0x6   : > { %p451_p4 = scmp.lt.s32.totalorder (!%p385_p3), %s2331_s13, 1  ;;  %p1995_p5 = scmp.ne.s32.totalorder (!%p385_p3), %s2331_s13, 0 }
   0x7   : > { %388 = sbr.rel (%p385_p3) target bundleno = 3198 (0xc7e), region = 60 }
   0xc   : > { %s2438_s18 = scalar_select %p451_p4, %s2331_s13, 1 }
   0xd   : > { %484 = sbr.rel (%p1995_p5) target bundleno = 306 (0x132), region = 64 }
   0xe   : > { %s2101_s19 = sshll.u32 %s2438_s18, 4  ;;  %s2105_s21 = sshll.u32 %s2438_s18, 6 }
   0xf   : > { %s2448_s25 = scalar_lea.vmem %s2899_s3, %s2101_s19  ;;  %s2453_s28 = scalar_lea.vmem %s2901_s5, %s2101_s19 }
  0x10   : > { %s2458_s11 = scalar_lea.vmem %s2902_s6, %s2101_s19  ;;  %s2463_s20 = scalar_lea.vmem %s2903_s7, %s2101_s19 }
  0x11   : > { %s2469_s24 = scalar_lea.vmem %s2904_s8, %s2105_s21 }
  0x12   : > { %v487_v0 = vld [vmem:[%s2896_s0] sm:$0x3]  ;;  %vm489_vm0 = vcmask 257024   ;;  %vm526_vm1 = vcmask 261120   ;;  %v2341_v8 = vmov 32.0  }
  0x13   : > { %v524_v1 = vld [vmem:[%s2897_s1] sm:$0xff]   ;;  %v488_v2 = vunpack.c.l.bf16 %v487_v0  ;;  %2175 = vrcp.f32 %v2341_v8 }
  0x14   : > { %v555_v3 = vunpack.c.h.bf16 %v524_v1  ;;  %v525_v6 = vunpack.c.l.bf16 %v524_v1  ;;  %v2173_v47 = vld [vmem:[%s2898_s2] ss:$0 sm:$0xff]  ;;  %v2174_v51 = vld [vmem:[%s2898_s2 + $0x1] ss:$0 sm:$0xff] }
  0x15   : > { %v490_v4 = vsel %vm489_vm0, %v488_v2, 0.0 }
  0x16   : > { %v556_v5 = vsel %vm526_vm1, %v555_v3, 0.0  ;;  %491 = vadd.xlane.f32.xlu0 %v490_v4  ;;  %v527_v7 = vsel %vm526_vm1, %v525_v6, 0.0 }
  0x17   : > { %557 = vadd.xlane.f32.xlu1 %v556_v5 }
  0x19   : > { %v2176_v9 = vpop.eup %2175 }
  0x1a   : > { %v494_v10 = vmul.f32 32.0, %v2176_v9  ;;  %vm498_vm2 = vweird.f32 %v2176_v9 }
  0x1c   : > { %v495_v11 = vsub.f32 1.0, %v494_v10 }
  0x1e   : > { %528 = vadd.xlane.f32.xlu0 %v527_v7  ;;  %v496_v12 = vmul.f32 %v2176_v9, %v495_v11 }
  0x20   : > { %v497_v13 = vadd.f32 %v2176_v9, %v496_v12 }
  0x22   : > { %v499_v14 = vsel %vm498_vm2, %v2176_v9, %v497_v13 }
  0x89   : > { %v492_v15 = vpop.xlane.xlu0 %491 }
  0x8a   : > { %v500_v16 = vmul.f32 %v499_v14, %v492_v15  ;;  %v558_v19 = vpop.xlane.xlu1 %557 }
  0x8b   : > { %v559_v23 = vmul.f32 %v558_v19, %v499_v14 }
  0x8c   : > { %v501_v17 = vsub.f32 %v488_v2, %v500_v16 }
  0x8d   : > { %v560_v25 = vsub.f32 %v555_v3, %v559_v23 }
  0x8e   : > { %v502_v18 = vmul.f32 %v501_v17, %v501_v17 }
  0x8f   : > { %v561_v28 = vmul.f32 %v560_v25, %v560_v25 }
  0x90   : > { %v503_v20 = vsel %vm489_vm0, %v502_v18, 0.0 }
  0x91   : > { %504 = vadd.xlane.f32.xlu1 %v503_v20  ;;  %v529_v21 = vpop.xlane.xlu0 %528  ;;  %v562_v29 = vsel %vm526_vm1, %v561_v28, 0.0 }
  0x92   : > { %v530_v22 = vmul.f32 %v529_v21, %v499_v14 }
  0x94   : > { %v531_v24 = vsub.f32 %v525_v6, %v530_v22 }
  0x96   : > { %v532_v26 = vmul.f32 %v531_v24, %v531_v24 }
  0x98   : > { %v533_v27 = vsel %vm526_vm1, %v532_v26, 0.0 }
  0x99   : > { %534 = vadd.xlane.f32.xlu2 %v533_v27 }
  0xa1   : > { %563 = vadd.xlane.f32.xlu2 %v562_v29 }
 0x104   : > { %v505_v30 = vpop.xlane.xlu1 %504 }
 0x105   : > { %v506_v31 = vmul.f32 %v505_v30, %v499_v14 }
 0x107   : > { %v507_v32 = vadd.f32 1e-05, %v506_v31 }
 0x109   : > { %2177 = vrsqrt.f32 %v507_v32  ;;  %vm514_vm4 = vweird.f32 %v507_v32 }
 0x10c   : > { %v535_v33 = vpop.xlane.xlu2 %534 }
 0x10d   : > { %v536_v34 = vmul.f32 %v535_v33, %v499_v14 }
 0x10f   : > { %v2178_v35 = vpop.eup %2177  ;;  %v537_v36 = vadd.f32 1e-05, %v536_v34 }
 0x110   : > { %v509_v37 = vmul.f32 %v2178_v35, %v507_v32  ;;  %vm515_vm3 = vweird.f32 %v2178_v35 }
 0x111   : > { %2179 = vrsqrt.f32 %v537_v36  ;;  %vm516_vm5 = vmor %vm514_vm4, %vm515_vm3  ;;  %vm544_vm7 = vweird.f32 %v537_v36 }
 0x112   : > { %v510_v38 = vmul.f32 %v2178_v35, %v509_v37 }
 0x114   : > { %v511_v39 = vmul.f32 0.5, %v510_v38  ;;  %v564_v40 = vpop.xlane.xlu2 %563 }
 0x115   : > { %v565_v41 = vmul.f32 %v564_v40, %v499_v14 }
 0x116   : > { %v512_v42 = vsub.f32 1.5, %v511_v39 }
 0x117   : > { %v2180_v43 = vpop.eup %2179  ;;  %v566_v44 = vadd.f32 1e-05, %v565_v41 }
 0x118   : > { %v513_v45 = vmul.f32 %v2178_v35, %v512_v42  ;;  %v539_v46 = vmul.f32 %v2180_v43, %v537_v36  ;;  %vm545_vm6 = vweird.f32 %v2180_v43 }
 0x119   : > { %2181 = vrsqrt.f32 %v566_v44  ;;  %vm546_vm8 = vmor %vm544_vm7, %vm545_vm6  ;;  %vm573_vm10 = vweird.f32 %v566_v44 }
 0x11a   : > { %v517_v48 = vsel %vm516_vm5, %v2178_v35, %v513_v45  ;;  %v540_v49 = vmul.f32 %v2180_v43, %v539_v46 }
 0x11b   : > { %v518_v50 = vmul.f32 %v517_v48, %v501_v17 }
 0x11c   : > { %v541_v52 = vmul.f32 0.5, %v540_v49 }
 0x11d   : > { %v520_v53 = vmul.f32 %v2173_v47, %v518_v50 }
 0x11e   : > { %v542_v54 = vsub.f32 1.5, %v541_v52 }
 0x11f   : > { %v2182_v55 = vpop.eup %2181  ;;  %v522_v56 = vadd.f32 %v2174_v51, %v520_v53 }
 0x120   : > { %v543_v57 = vmul.f32 %v2180_v43, %v542_v54  ;;  %v568_v58 = vmul.f32 %v2182_v55, %v566_v44  ;;  %vm574_vm9 = vweird.f32 %v2182_v55 }
 0x121   : > { %523 = vst.msk [vmem:[#allocation2] sm:$0xf] %vm489_vm0, %v522_v56  ;;  %vm575_vm11 = vmor %vm573_vm10, %vm574_vm9 }
 0x122   : > { %552 = vst.msk [vmem:[#allocation2 + $0xc] sm:$0xf] %vm489_vm0, %v522_v56  ;;  %v547_v59 = vsel %vm546_vm8, %v2180_v43, %v543_v57  ;;  %v569_v60 = vmul.f32 %v2182_v55, %v568_v58 }
 0x123   : > { %v548_v61 = vmul.f32 %v547_v59, %v531_v24 }
 0x124   : > { %v570_v62 = vmul.f32 0.5, %v569_v60 }
 0x125   : > { %v549_v63 = vmul.f32 %v2173_v47, %v548_v61 }
 0x126   : > { %v571_v0 = vsub.f32 1.5, %v570_v62 }
 0x127   : > { %v550_v1 = vadd.f32 %v2174_v51, %v549_v63 }
 0x128   : > { %v572_v2 = vmul.f32 %v2182_v55, %v571_v0 }
 0x129   : > { %551 = vst.msk [vmem:[#allocation2 + $0x4] sm:$0xff] %vm526_vm1, %v550_v1 }
 0x12a   : > { %v576_v3 = vsel %vm575_vm11, %v2182_v55, %v572_v2 }
 0x12b   : > { %v577_v4 = vmul.f32 %v576_v3, %v560_v25 }
 0x12d   : > { %v578_v5 = vmul.f32 %v2173_v47, %v577_v4 }
 0x12f   : > { %v579_v6 = vadd.f32 %v2174_v51, %v578_v5 }
 0x131   : > { %580 = vst.msk [vmem:[#allocation2 + $0x10] sm:$0xff] %vm526_vm1, %v579_v6 }
 0x132 PF: > { %v581_v7 = vld [vmem:[#allocation2] sm:$0xff]  ;;  %vm586_vm12 = vcmask 261120   ;;  %v582_v9 = vld [vmem:[#allocation2 + $0x8] sm:$0xff]  ;;  %v2342_v11 = vmov 32.0   ;;  %s2343_s21 = smov 32   ;;  %s2345_s23 = smov 88  }
 0x133   : > { %v587_v8 = vsel %vm586_vm12, %v581_v7, 0.0  ;;  %v590_v10 = vsel %vm586_vm12, %v582_v9, 0.0  ;;  %2185 = vrcp.f32 %v2342_v11  ;;  %v2107_v28 = vld [vmem:[%s2453_s28 + $0x8] sm:$0xff]  ;;  %v2106_v30 = vld [vmem:[%s2453_s28] sm:$0xff]  ;;  %s2344_s28 = smov 96   ;;  %s2346_s26 = smov 120  }
 0x134   : > { %588 = vadd.xlane.f32.xlu0 %v587_v8  ;;  %698 = vmatpush.bf16.msra.mxu0 %v2107_v28  ;;  %v2506_v33 = vld [vmem:[%s2448_s25] sm:$0xff]  ;;  %s2347_s27 = smov 80   ;;  %s2348_s29 = smov 64   ;;  %vm754_vm4 = vcmask 64512   ;;  %vm810_vm8 = vcmask 1045504   ;;  %vm775_vm9 = vcmask 97280  }
 0x135   : > { %v720_v34 = vperm.slane %v2506_v33, 3  ;;  %v2515_v53 = vperm.slane %v2506_v33, 0  ;;  %v2519_v58 = vperm.slane %v2506_v33, 1  ;;  %v2526_v63 = vperm.slane %v2506_v33, 2  ;;  %s2349_s30 = smov 56   ;;  %s2350_s16 = smov 112  }
 0x136   : > { %vm779_vm10 = vcmask 93184   ;;  %s2351_s19 = smov 72   ;;  %s2352_s22 = smov 104   ;;  %vm829_vm11 = vcmask 60416  }
 0x137   : > { %722 = vrot.lane.b32.xlu2 %v720_v34, %s2343_s21  ;;  %s2353_s12 = smov 40   ;;  %s2354_s21 = smov 48  }
 0x138   : > { %699 = vmatpush.bf16.msra.mxu0 %v2106_v30  ;;  %v2509_v35 = vld [vmem:[#allocation2 + $0x10] sm:$0xff]  ;;  %p2078_p6 = scmp.ne.s32.totalorder %s2331_s13, 1 }
 0x139   : > { %v2186_v12 = vpop.eup %2185  ;;  %v593_v37 = vsel %vm586_vm12, %v2509_v35, 0.0 }
 0x13a   : > { %v597_v13 = vmul.f32 32.0, %v2186_v12  ;;  %vm601_vm13 = vweird.f32 %v2186_v12 }
 0x13c   : > { %591 = vadd.xlane.f32.xlu0 %v590_v10  ;;  %v598_v14 = vsub.f32 1.0, %v597_v13 }
 0x13e   : > { %v599_v15 = vmul.f32 %v2186_v12, %v598_v14 }
 0x140   : > { %v600_v16 = vadd.f32 %v2186_v12, %v599_v15 }
 0x142   : > { %v2496_v17 = vsel %vm601_vm13, %v2186_v12, %v600_v16  ;;  %vm910_vm13 = vcmask 126016  }
 0x191   : > { %v2528_v1 = vpop.permute.xlu2 %722 }
 0x1a7   : > { %v589_v18 = vpop.xlane.xlu0 %588 }
 0x1a8   : > { %v603_v19 = vmul.f32 %v2496_v17, %v589_v18 }
 0x1aa   : > { %v606_v20 = vsub.f32 %v581_v7, %v603_v19 }
 0x1ac   : > { %v609_v21 = vmul.f32 %v606_v20, %v606_v20 }
 0x1ae   : > { %v612_v22 = vsel %vm586_vm12, %v609_v21, 0.0 }
 0x1af   : > { %613 = vadd.xlane.f32.xlu1 %v612_v22  ;;  %v592_v23 = vpop.xlane.xlu0 %591 }
 0x1b0   : > { %v604_v24 = vmul.f32 %v2496_v17, %v592_v23 }
 0x1b2   : > { %v607_v25 = vsub.f32 %v582_v9, %v604_v24 }
 0x1b4   : > { %v610_v26 = vmul.f32 %v607_v25, %v607_v25 }
 0x1b6   : > { %v615_v27 = vsel %vm586_vm12, %v610_v26, 0.0 }
 0x1b7   : > { %616 = vadd.xlane.f32.xlu1 %v615_v27 }
 0x1bf   : > { %594 = vadd.xlane.f32.xlu1 %v593_v37 }
 0x222   : > { %v614_v29 = vpop.xlane.xlu1 %613 }
 0x223   : > { %v621_v31 = vmul.f32 %v614_v29, %v2496_v17 }
 0x225   : > { %v624_v32 = vadd.f32 1e-05, %v621_v31 }
 0x227   : > { %2187 = vrsqrt.f32 %v624_v32  ;;  %vm633_vm15 = vweird.f32 %v624_v32 }
 0x22a   : > { %v617_v36 = vpop.xlane.xlu1 %616 }
 0x22b   : > { %v622_v38 = vmul.f32 %v617_v36, %v2496_v17 }
 0x22d   : > { %v2188_v39 = vpop.eup %2187  ;;  %v625_v40 = vadd.f32 1e-05, %v622_v38 }
 0x22e   : > { %v628_v41 = vmul.f32 %v2188_v39, %v624_v32  ;;  %vm634_vm14 = vweird.f32 %v2188_v39 }
 0x22f   : > { %2189 = vrsqrt.f32 %v625_v40  ;;  %vm635_vm0 = vmor %vm633_vm15, %vm634_vm14  ;;  %vm643_vm2 = vweird.f32 %v625_v40  ;;  %vm908_vm14 = vcmask 130112   ;;  %vm989_vm15 = vcmask 195712  }
 0x230   : > { %v629_v42 = vmul.f32 %v2188_v39, %v628_v41 }
 0x232   : > { %v630_v43 = vmul.f32 0.5, %v629_v42  ;;  %v595_v21 = vpop.xlane.xlu1 %594 }
 0x233   : > { %v605_v22 = vmul.f32 %v2496_v17, %v595_v21 }
 0x234   : > { %v631_v44 = vsub.f32 1.5, %v630_v43 }
 0x235   : > { %v2190_v45 = vpop.eup %2189  ;;  %v608_v23 = vsub.f32 %v2509_v35, %v605_v22 }
 0x236   : > { %v632_v46 = vmul.f32 %v2188_v39, %v631_v44  ;;  %v638_v47 = vmul.f32 %v2190_v45, %v625_v40  ;;  %vm644_vm1 = vweird.f32 %v2190_v45 }
 0x237   : > { %vm645_vm3 = vmor %vm643_vm2, %vm644_vm1  ;;  %v611_v24 = vmul.f32 %v608_v23, %v608_v23  ;;  %vm1070_vm1 = vcmask 261312   ;;  %vm1072_vm2 = vcmask 257216  }
 0x238   : > { %v639_v48 = vmul.f32 %v2190_v45, %v638_v47  ;;  %v636_v49 = vsel %vm635_vm0, %v2188_v39, %v632_v46  ;;  %vm991_vm0 = vcmask 191616  }
 0x239   : > { %v657_v52 = vmul.f32 %v636_v49, %v606_v20  ;;  %v731_v20 = vperm.slane %v2506_v33, 4 }
 0x23a   : > { %v640_v50 = vmul.f32 0.5, %v639_v48 }
 0x23b   : > { %v661_v57 = vmul.f32 %v2515_v53, %v657_v52 }
 0x23c   : > { %v641_v51 = vsub.f32 1.5, %v640_v50 }
 0x23d   : > { %v665_v60 = vadd.f32 %v2519_v58, %v661_v57 }
 0x23e   : > { %v642_v54 = vmul.f32 %v2190_v45, %v641_v51 }
 0x240   : > { %v646_v55 = vsel %vm645_vm3, %v2190_v45, %v642_v54 }
 0x241   : > { %v658_v56 = vmul.f32 %v646_v55, %v607_v25  ;;  %v618_v25 = vsel %vm586_vm12, %v611_v24, 0.0 }
 0x243   : > { %v662_v59 = vmul.f32 %v2515_v53, %v658_v56 }
 0x245   : > { %v666_v61 = vadd.f32 %v2519_v58, %v662_v59 }
 0x247   : > { %v668_v62 = vpack.c.bf16 %v666_v61, %v665_v60 }
 0x249   : > { %2005 = vmatmul.msk.bf16.vlgmr.msra.gmra.mxu0 %vm586_vm12, %v668_v62 }
 0x2c6   : > { %v701_v0 = vpop.f32.mrf.mxu0 }
 0x2c7   : > { %v711_v2 = vadd.f32 %v2526_v63, %v701_v0  ;;  %v725_v3 = vadd.f32 %v2528_v1, %v701_v0 }
 0x2c9   : > { %v714_v4 = vmul.f32 0.35355338, %v711_v2  ;;  %v728_v6 = vpack.c.bf16 %v725_v3, %v725_v3 }
 0x2cb   : > { %v717_v9 = vpack.c.bf16 %v714_v4, %v714_v4  ;;  %v749_v12 = vunpack.c.l.b16 %v728_v6 }
 0x2cd   : > { %v744_v15 = vunpack.c.l.b16 %v717_v9 }
 0x2ce   : > { %v703_v5 = vpop.f32.mrf.mxu0 }
 0x2cf   : > { %v712_v7 = vadd.f32 %v2526_v63, %v703_v5  ;;  %v726_v8 = vadd.f32 %v2528_v1, %v703_v5 }
 0x2d1   : > { %v715_v10 = vmul.f32 0.35355338, %v712_v7  ;;  %v729_v11 = vpack.c.bf16 %v726_v8, %v726_v8 }
 0x2d3   : > { %v718_v13 = vpack.c.bf16 %v715_v10, %v715_v10  ;;  %v2534_v14 = vunpack.c.l.b16 %v729_v11 }
 0x2d5   : > { %v2536_v16 = vunpack.c.l.b16 %v718_v13  ;;  %v2539_v18 = vpack.c.b16 %v2534_v14, %v749_v12 }
 0x2d7   : > { %v2542_v19 = vpack.c.b16 %v2536_v16, %v744_v15  ;;  %752 = vrot.lane.b32.xlu1 %v2539_v18, %s2344_s28  ;;  %833 = vrot.lane.b32.xlu2 %v2539_v18, %s2345_s23 }
 0x2d9   : > { %831 = vrot.lane.b32.xlu0 %v2542_v19, %s2346_s26 }
 0x2df   : > { %914 = vrot.lane.b32.xlu1 %v2539_v18, %s2347_s27 }
 0x2e1   : > { %733 = vrot.lane.b32.xlu0 %v731_v20, %s2348_s29 }
 0x300   : > { %619 = vadd.xlane.f32.xlu2 %v618_v25 }
 0x331   : > { %v834_v26 = vpop.permute.xlu2 %833 }
 0x332   : > { %v839_v27 = vsel %vm754_vm4, %v834_v26, 0 }
 0x333   : > { %848 = vmatpush.bf16.xpose.msra.mxu3 %v839_v27 }
 0x349   : > { %v753_v28 = vpop.permute.xlu1 %752 }
 0x34a   : > { %v759_v29 = vsel %vm754_vm4, %v753_v28, 0 }
 0x34b   : > { %v832_v30 = vpop.permute.xlu0 %831  ;;  %768 = vmatpush.bf16.xpose.msra.mxu1 %v759_v29 }
 0x34c   : > { %2009 = vmatmul.msk.bf16.vlgmr.msra.gmra.mxu3 %vm754_vm4, %v832_v30 }
 0x351   : > { %v915_v31 = vpop.permute.xlu1 %914 }
 0x352   : > { %2007 = vmatmul.msk.bf16.vlgmr.msra.gmra.mxu1 %vm754_vm4, %v2542_v19  ;;  %v920_v32 = vsel %vm754_vm4, %v915_v31, 0 }
 0x353   : > { %v2563_v33 = vpop.permute.xlu0 %733  ;;  %929 = vmatpush.bf16.xpose.msrb.mxu1 %v920_v32 }
 0x354   : > { %v736_v34 = vadd.f32 %v2563_v33, %v701_v0  ;;  %v737_v35 = vadd.f32 %v2563_v33, %v703_v5 }
 0x356   : > { %v739_v36 = vpack.c.bf16 %v736_v34, %v736_v34  ;;  %v740_v37 = vpack.c.bf16 %v737_v35, %v737_v35 }
 0x358   : > { %v802_v38 = vunpack.c.l.b16 %v739_v36  ;;  %v2567_v39 = vunpack.c.l.b16 %v740_v37 }
 0x35a   : > { %v2570_v40 = vpack.c.b16 %v2567_v39, %v802_v38 }
 0x35c   : > { %878 = vrot.lane.b32.xlu2 %v2570_v40, %s2349_s30 }
 0x364   : > { %912 = vrot.lane.b32.xlu2 %v2542_v19, %s2350_s16 }
 0x373   : > { %v620_v41 = vpop.xlane.xlu2 %619 }
 0x374   : > { %v623_v42 = vmul.f32 %v620_v41, %v2496_v17 }
 0x376   : > { %v626_v43 = vadd.f32 1e-05, %v623_v42 }
 0x378   : > { %2191 = vrsqrt.f32 %v626_v43  ;;  %vm653_vm5 = vweird.f32 %v626_v43 }
 0x37e   : > { %v2192_v44 = vpop.eup %2191 }
 0x37f   : > { %v648_v45 = vmul.f32 %v2192_v44, %v626_v43  ;;  %vm654_vm6 = vweird.f32 %v2192_v44 }
 0x380   : > { %vm655_vm7 = vmor %vm653_vm5, %vm654_vm6 }
 0x381   : > { %v649_v46 = vmul.f32 %v2192_v44, %v648_v45 }
 0x383   : > { %v650_v47 = vmul.f32 0.5, %v649_v46 }
 0x385   : > { %v651_v48 = vsub.f32 1.5, %v650_v47 }
 0x387   : > { %v652_v49 = vmul.f32 %v2192_v44, %v651_v48 }
 0x389   : > { %v656_v50 = vsel %vm655_vm7, %v2192_v44, %v652_v49 }
 0x38a   : > { %v659_v51 = vmul.f32 %v656_v50, %v608_v23 }
 0x38c   : > { %v663_v52 = vmul.f32 %v2515_v53, %v659_v51 }
 0x38e   : > { %v667_v54 = vadd.f32 %v2519_v58, %v663_v52 }
 0x390   : > { %v669_v55 = vpack.c.bf16 %v667_v54, %v667_v54 }
 0x392   : > { %2006 = vmatmul.msk.bf16.gmra.mxu0 %vm586_vm12, %v669_v55 }
 0x3b6   : > { %v879_v56 = vpop.permute.xlu2 %878 }
 0x3b7   : > { %v884_v57 = vsel %vm810_vm8, %v879_v56, 0 }
 0x3b8   : > { %893 = vmatpush.bf16.msra.mxu2 %v884_v57 }
 0x3be   : > { %v913_v59 = vpop.permute.xlu2 %912 }
 0x3bf   : > { %2011 = vmatmul.msk.bf16.vlgmr.msrb.gmra.mxu1 %vm754_vm4, %v913_v59 }
 0x3cf   : > { %v850_v60 = vpop.f32.mrf.mxu3 }
 0x3d0   : > { %v855_v61 = vsel %vm775_vm9, %v850_v60, -inf }
 0x3d1   : > { %856 = vmax.xlane.f32.xlu1 %v855_v61 }
 0x3d7   : > { %v852_v53 = vpop.f32.mrf.mxu3 }
 0x3d8   : > { %v858_v58 = vsel %vm779_vm10, %v852_v53, -inf }
 0x3d9   : > { %859 = vmax.xlane.f32.xlu1 %v858_v58 }
 0x3f2   : > { %995 = vrot.lane.b32.xlu1 %v2539_v18, %s2351_s19 }
 0x40f   : > { %v2586_v62 = vpop.f32.mrf.mxu0 }
 0x410   : > { %v727_v0 = vadd.f32 %v2528_v1, %v2586_v62  ;;  %v713_v3 = vadd.f32 %v2526_v63, %v2586_v62  ;;  %v2597_v1 = vpop.f32.mrf.mxu1 }
 0x411   : > { %v776_v32 = vsel %vm775_vm9, %v2597_v1, -inf }
 0x412   : > { %v730_v2 = vpack.c.bf16 %v727_v0, %v727_v0  ;;  %v716_v7 = vmul.f32 0.35355338, %v713_v3 }
 0x414   : > { %v1079_v4 = vunpack.c.l.b16 %v730_v2  ;;  %v719_v9 = vpack.c.bf16 %v716_v7, %v716_v7 }
 0x416   : > { %v1080_v5 = vpack.c.b16 %v1079_v4, %v2534_v14  ;;  %v1075_v10 = vunpack.c.l.b16 %v719_v9 }
 0x417   : > { %v708_v6 = vpop.f32.mrf.mxu0 }
 0x418   : > { %v1081_v8 = vrot.slane %v1080_v5, 2  ;;  %v1076_v11 = vpack.c.b16 %v1075_v10, %v2536_v16  ;;  %v2599_v13 = vpop.f32.mrf.mxu1 }
 0x419   : > { %v780_v16 = vsel %vm779_vm10, %v2599_v13, -inf }
 0x41a   : > { %1157 = vrot.lane.b32.xlu2 %v1081_v8, %s2345_s23  ;;  %v1077_v12 = vrot.slane %v1076_v11, 2  ;;  %s2356_s23 = smov 16  }
 0x422   : > { %1236 = vrot.lane.b32.xlu2 %v1081_v8, %s2347_s27  ;;  %s2907_s27 = scalar_lea.vmem %s2900_s4, %s2438_s18 }
 0x42a   : > { %1234 = vrot.lane.b32.xlu2 %v1077_v12, %s2350_s16 }
 0x43c   : > { %v2601_v20 = vpop.f32.mrf.mxu1 }
 0x43d   : > { %v936_v31 = vsel %vm775_vm9, %v2601_v20, -inf }
 0x444   : > { %v857_v63 = vpop.xlane.xlu1 %856  ;;  %v2606_v26 = vpop.f32.mrf.mxu1 }
 0x445   : > { %v861_v14 = vsub.f32 %v850_v60, %v857_v63  ;;  %v939_v28 = vsel %vm779_vm10, %v2606_v26, -inf }
 0x447   : > { %v863_v15 = vmul.f32 1.442695, %v861_v14 }
 0x449   : > { %2193 = vpow2.f32 %v863_v15 }
 0x44c   : > { %v860_v18 = vpop.xlane.xlu1 %859 }
 0x44d   : > { %v862_v21 = vsub.f32 %v852_v53, %v860_v18 }
 0x44f   : > { %v2194_v22 = vpop.eup %2193  ;;  %v865_v23 = vmul.f32 1.442695, %v862_v21 }
 0x450   : > { %v867_v24 = vsel %vm775_vm9, %v2194_v22, 0.0 }
 0x451   : > { %2195 = vpow2.f32 %v865_v23  ;;  %868 = vadd.xlane.f32.xlu1 %v867_v24 }
 0x453   : > { %781 = vmax.xlane.f32.xlu2 %v780_v16 }
 0x457   : > { %v2196_v25 = vpop.eup %2195 }
 0x458   : > { %v870_v27 = vsel %vm779_vm10, %v2196_v25, 0.0 }
 0x459   : > { %871 = vadd.xlane.f32.xlu0 %v870_v27 }
 0x45b   : > { %940 = vmax.xlane.f32.xlu2 %v939_v28 }
 0x464   : > { %v996_v29 = vpop.permute.xlu1 %995 }
 0x465   : > { %v1001_v30 = vsel %vm754_vm4, %v996_v29, 0 }
 0x466   : > { %1010 = vmatpush.bf16.xpose.msrb.mxu2 %v1001_v30 }
 0x46a   : > { %1082 = vrot.lane.b32.xlu1 %v1081_v8, %s2344_s28  ;;  %s2355_s28 = smov 8  }
 0x46d   : > { %993 = vrot.lane.b32.xlu0 %v2542_v19, %s2352_s22 }
 0x472   : > { %1155 = vrot.lane.b32.xlu1 %v1077_v12, %s2346_s26  ;;  %s2357_s26 = smov 24  }
 0x474   : > { %v1158_v37 = vpop.permute.xlu2 %1157 }
 0x475   : > { %1313 = vrot.lane.b32.xlu0 %v1077_v12, %s2352_s22  ;;  %v1163_v43 = vsel %vm754_vm4, %v1158_v37, 0 }
 0x47a   : > { %1315 = vrot.lane.b32.xlu1 %v1081_v8, %s2351_s19 }
 0x47c   : > { %v1237_v44 = vpop.permute.xlu2 %1236 }
 0x47d   : > { %v1242_v47 = vsel %vm754_vm4, %v1237_v44, 0 }
 0x484   : > { %v1235_v52 = vpop.permute.xlu2 %1234 }
 0x49f   : > { %937 = vmax.xlane.f32.xlu0 %v936_v31 }
 0x4a4   : > { %777 = vmax.xlane.f32.xlu1 %v776_v32 }
 0x4c4   : > { %v869_v34 = vpop.xlane.xlu1 %868 }
 0x4c5   : > { %2197 = vrcp.f32 %v869_v34 }
 0x4c6   : > { %v782_v55 = vpop.xlane.xlu2 %781 }
 0x4c7   : > { %v784_v56 = vsub.f32 %v2599_v13, %v782_v55 }
 0x4c9   : > { %v787_v57 = vmul.f32 1.442695, %v784_v56 }
 0x4cb   : > { %v2198_v36 = vpop.eup %2197 }
 0x4cc   : > { %v872_v35 = vpop.xlane.xlu0 %871  ;;  %v875_v38 = vmul.f32 %v2198_v36, %v2194_v22 }
 0x4cd   : > { %2199 = vrcp.f32 %v872_v35 }
 0x4ce   : > { %2201 = vpow2.f32 %v787_v57  ;;  %v941_v63 = vpop.xlane.xlu2 %940 }
 0x4cf   : > { %v943_v13 = vsub.f32 %v2606_v26, %v941_v63 }
 0x4d1   : > { %v946_v15 = vmul.f32 1.442695, %v943_v13 }
 0x4d3   : > { %v2200_v19 = vpop.eup %2199 }
 0x4d4   : > { %v876_v41 = vmul.f32 %v2200_v19, %v2196_v25  ;;  %v2632_v61 = vpop.eup %2201 }
 0x4d5   : > { %v792_v58 = vsel %vm779_vm10, %v2632_v61, 0.0 }
 0x4d6   : > { %v877_v42 = vpack.c.bf16 %v876_v41, %v875_v38 }
 0x4d8   : > { %2010 = vmatmul.msk.bf16.vlgmr.msra.gmra.mxu2 %vm775_vm9, %v877_v42 }
 0x4d9   : > { %1172 = vmatpush.bf16.xpose.msra.mxu2 %v1163_v43 }
 0x4dc   : > { %v1083_v45 = vpop.permute.xlu1 %1082 }
 0x4dd   : > { %v1088_v46 = vsel %vm754_vm4, %v1083_v45, 0 }
 0x4de   : > { %1097 = vmatpush.bf16.xpose.msra.mxu1 %v1088_v46 }
 0x4df   : > { %v994_v49 = vpop.permute.xlu0 %993 }
 0x4e4   : > { %v1156_v48 = vpop.permute.xlu1 %1155 }
 0x4e5   : > { %2015 = vmatmul.msk.bf16.vlgmr.msra.gmra.mxu1 %vm754_vm4, %v1077_v12 }
 0x4e6   : > { %1251 = vmatpush.bf16.xpose.msrb.mxu1 %v1242_v47 }
 0x4e7   : > { %v1314_v54 = vpop.permute.xlu0 %1313 }
 0x4e8   : > { %2013 = vmatmul.msk.bf16.vlgmr.msrb.gmra.mxu2 %vm754_vm4, %v994_v49 }
 0x4ec   : > { %v1316_v50 = vpop.permute.xlu1 %1315 }
 0x4ed   : > { %v1321_v51 = vsel %vm754_vm4, %v1316_v50, 0 }
 0x4ee   : > { %1330 = vmatpush.bf16.xpose.msrb.mxu2 %v1321_v51 }
 0x4f5   : > { %2019 = vmatmul.msk.bf16.vlgmr.msrb.gmra.mxu1 %vm754_vm4, %v1235_v52 }
 0x4f8   : > { %2017 = vmatmul.msk.bf16.vlgmr.msra.gmra.mxu2 %vm754_vm4, %v1156_v48 }
 0x508   : > { %2021 = vmatmul.msk.bf16.vlgmr.msrb.gmra.mxu2 %vm754_vm4, %v1314_v54 }
 0x512   : > { %v938_v23 = vpop.xlane.xlu0 %937 }
 0x513   : > { %v942_v16 = vsub.f32 %v2601_v20, %v938_v23 }
 0x515   : > { %v944_v25 = vmul.f32 1.442695, %v942_v16 }
 0x517   : > { %v778_v2 = vpop.xlane.xlu1 %777 }
 0x518   : > { %v783_v3 = vsub.f32 %v2597_v1, %v778_v2 }
 0x51a   : > { %v785_v6 = vmul.f32 1.442695, %v783_v3 }
 0x51c   : > { %2203 = vpow2.f32 %v785_v6 }
 0x51d   : > { %2205 = vpow2.f32 %v946_v15 }
 0x51e   : > { %2207 = vpow2.f32 %v944_v25 }
 0x522   : > { %v2648_v10 = vpop.eup %2203 }
 0x523   : > { %v789_v11 = vsel %vm775_vm9, %v2648_v10, 0.0  ;;  %v2667_v21 = vpop.eup %2205 }
 0x524   : > { %v951_v22 = vsel %vm779_vm10, %v2667_v21, 0.0  ;;  %v2679_v29 = vpop.eup %2207 }
 0x525   : > { %v948_v20 = vsel %vm775_vm9, %v2679_v29, 0.0 }
 0x55b   : > { %v2646_v9 = vpop.f32.mrf.mxu2 }
 0x562   : > { %v1099_v59 = vpop.f32.mrf.mxu1 }
 0x563   : > { %v1104_v60 = vsel %vm775_vm9, %v1099_v59, -inf  ;;  %v2654_v12 = vpop.f32.mrf.mxu2 }
 0x564   : > { %1105 = vmax.xlane.f32.xlu2 %v1104_v60 }
 0x56a   : > { %v1101_v53 = vpop.f32.mrf.mxu1 }
 0x56b   : > { %v1107_v0 = vsel %vm779_vm10, %v1101_v53, -inf  ;;  %v2658_v1 = vpop.f32.mrf.mxu2 }
 0x56c   : > { %793 = vadd.xlane.f32.xlu2 %v792_v58  ;;  %1108 = vmax.xlane.f32.xlu1 %v1107_v0  ;;  %v1017_v26 = vsel %vm775_vm9, %v2658_v1, -inf }
 0x572   : > { %v2638_v4 = vpop.f32.mrf.mxu1 }
 0x573   : > { %v1258_v5 = vsel %vm775_vm9, %v2638_v4, -inf  ;;  %v2663_v14 = vpop.f32.mrf.mxu2 }
 0x574   : > { %1259 = vmax.xlane.f32.xlu1 %v1258_v5  ;;  %v1020_v30 = vsel %vm779_vm10, %v2663_v14, -inf }
 0x57a   : > { %v2642_v7 = vpop.f32.mrf.mxu1 }
 0x57b   : > { %v1261_v8 = vsel %vm779_vm10, %v2642_v7, -inf  ;;  %v2665_v18 = vpop.f32.mrf.mxu2 }
 0x57c   : > { %1262 = vmax.xlane.f32.xlu0 %v1261_v8  ;;  %v1179_v47 = vsel %vm775_vm9, %v2665_v18, -inf }
 0x583   : > { %v1176_v24 = vpop.f32.mrf.mxu2 }
 0x584   : > { %1040 = vrot.lane.b32.xlu2 %v2570_v40, %s2353_s12  ;;  %790 = vadd.xlane.f32.xlu0 %v789_v11 }
 0x58b   : > { %v2675_v27 = vpop.f32.mrf.mxu2 }
 0x58c   : > { %v1337_v28 = vsel %vm775_vm9, %v2675_v27, -inf }
 0x58d   : > { %805 = vrot.lane.b32.xlu1 %v2570_v40, %s2348_s29 }
 0x593   : > { %v2689_v41 = vpop.f32.mrf.mxu2 }
 0x594   : > { %v1340_v43 = vsel %vm779_vm10, %v2689_v41, -inf }
 0x598   : > { %959 = vrot.lane.b32.xlu0 %v2570_v40, %s2354_s21  ;;  %v1182_v40 = vsel %vm779_vm10, %v1176_v24, -inf }
 0x5ad   : > { %952 = vadd.xlane.f32.xlu2 %v951_v22 }
 0x5b5   : > { %1183 = vmax.xlane.f32.xlu2 %v1182_v40 }
 0x5b7   : > { %1018 = vmax.xlane.f32.xlu1 %v1017_v26 }
 0x5bd   : > { %1338 = vmax.xlane.f32.xlu2 %v1337_v28 }
 0x5c2   : > { %949 = vadd.xlane.f32.xlu0 %v948_v20 }
 0x5ca   : > { %1021 = vmax.xlane.f32.xlu0 %v1020_v30 }
 0x5d7   : > { %v1106_v31 = vpop.xlane.xlu2 %1105 }
 0x5d8   : > { %v1110_v32 = vsub.f32 %v1099_v59, %v1106_v31 }
 0x5da   : > { %v1112_v34 = vmul.f32 1.442695, %v1110_v32 }
 0x5dc   : > { %2209 = vpow2.f32 %v1112_v34 }
 0x5df   : > { %v1109_v35 = vpop.xlane.xlu1 %1108  ;;  %v794_v46 = vpop.xlane.xlu2 %793 }
 0x5e0   : > { %v1111_v36 = vsub.f32 %v1101_v53, %v1109_v35 }
 0x5e2   : > { %v2685_v37 = vpop.eup %2209  ;;  %v1114_v19 = vmul.f32 1.442695, %v1111_v36 }
 0x5e3   : > { %v1116_v38 = vsel %vm775_vm9, %v2685_v37, 0.0 }
 0x5e4   : > { %2211 = vpow2.f32 %v1114_v19  ;;  %1117 = vadd.xlane.f32.xlu1 %v1116_v38 }
 0x5e5   : > { %2213 = vrcp.f32 %v794_v46 }
 0x5e7   : > { %v2701_v48 = vpop.xlane.xlu1 %1259  ;;  %v1041_v52 = vpop.permute.xlu2 %1040 }
 0x5e8   : > { %v1046_v59 = vsel %vm810_vm8, %v1041_v52, 0 }
 0x5ea   : > { %v2691_v42 = vpop.eup %2211 }
 0x5eb   : > { %v1119_v44 = vsel %vm779_vm10, %v2691_v42, 0.0  ;;  %v2214_v50 = vpop.eup %2213 }
 0x5ec   : > { %1341 = vmax.xlane.f32.xlu1 %v1340_v43  ;;  %1120 = vadd.xlane.f32.xlu0 %v1119_v44  ;;  %v798_v54 = vmul.f32 %v2214_v50, %v2632_v61  ;;  %v1264_v50 = vsub.f32 %v2638_v4, %v2701_v48 }
 0x5ef   : > { %v2697_v45 = vpop.xlane.xlu0 %1262 }
 0x5f4   : > { %1180 = vmax.xlane.f32.xlu0 %v1179_v47 }
 0x5f7   : > { %v791_v49 = vpop.xlane.xlu0 %790 }
 0x5f8   : > { %2215 = vrcp.f32 %v791_v49 }
 0x5fe   : > { %v2216_v51 = vpop.eup %2215 }
 0x5ff   : > { %v797_v55 = vmul.f32 %v2216_v51, %v2648_v10  ;;  %v806_v56 = vpop.permute.xlu1 %805 }
 0x600   : > { %v812_v57 = vsel %vm810_vm8, %v806_v56, 0 }
 0x601   : > { %821 = vmatpush.bf16.msrb.mxu0 %v812_v57  ;;  %v799_v60 = vpack.c.bf16 %v798_v54, %v797_v55 }
 0x604   : > { %2008 = vmatmul.msk.bf16.vlgmr.msrb.gmra.mxu0 %vm775_vm9, %v799_v60 }
 0x605   : > { %1055 = vmatpush.bf16.msra.mxu0 %v1046_v59 }
 0x60a   : > { %v960_v53 = vpop.permute.xlu0 %959 }
 0x60b   : > { %v965_v58 = vsel %vm810_vm8, %v960_v53, 0 }
 0x60c   : > { %974 = vmatpush.bf16.msrb.mxu3 %v965_v58 }
 0x620   : > { %v953_v0 = vpop.xlane.xlu2 %952 }
 0x628   : > { %v1184_v2 = vpop.xlane.xlu2 %1183 }
 0x629   : > { %v1186_v3 = vsub.f32 %v1176_v24, %v1184_v2 }
 0x62a   : > { %v1019_v61 = vpop.xlane.xlu1 %1018 }
 0x62b   : > { %v1189_v5 = vmul.f32 1.442695, %v1186_v3  ;;  %v1023_v6 = vsub.f32 %v2658_v1, %v1019_v61  ;;  %v738_v1 = vadd.f32 %v2563_v33, %v2586_v62 }
 0x62d   : > { %2217 = vpow2.f32 %v1189_v5  ;;  %v1025_v8 = vmul.f32 1.442695, %v1023_v6  ;;  %v741_v24 = vpack.c.bf16 %v738_v1, %v738_v1 }
 0x62f   : > { %2219 = vpow2.f32 %v1025_v8  ;;  %v1128_v30 = vunpack.c.l.b16 %v741_v24 }
 0x630   : > { %2221 = vrcp.f32 %v953_v0 }
 0x631   : > { %v1129_v31 = vpack.c.b16 %v1128_v30, %v2567_v39 }
 0x633   : > { %v2710_v10 = vpop.eup %2217  ;;  %v1130_v33 = vrot.slane %v1129_v31, 2 }
 0x634   : > { %v1194_v11 = vsel %vm779_vm10, %v2710_v10, 0.0 }
 0x635   : > { %v2714_v63 = vpop.eup %2219  ;;  %1195 = vadd.xlane.f32.xlu1 %v1194_v11  ;;  %v950_v13 = vpop.xlane.xlu0 %949 }
 0x636   : > { %2223 = vrcp.f32 %v950_v13  ;;  %v1029_v15 = vsel %vm775_vm9, %v2714_v63, 0.0  ;;  %v2222_v22 = vpop.eup %2221 }
 0x637   : > { %1030 = vadd.xlane.f32.xlu0 %v1029_v15  ;;  %v957_v16 = vmul.f32 %v2222_v22, %v2667_v21 }
 0x63c   : > { %v2224_v23 = vpop.eup %2223 }
 0x63d   : > { %v956_v25 = vmul.f32 %v2224_v23, %v2679_v29  ;;  %v1022_v40 = vpop.xlane.xlu0 %1021  ;;  %v1339_v29 = vpop.xlane.xlu2 %1338 }
 0x63e   : > { %v1024_v26 = vsub.f32 %v2663_v14, %v1022_v40  ;;  %v1343_v34 = vsub.f32 %v2675_v27, %v1339_v29  ;;  %v1266_v27 = vmul.f32 1.442695, %v1264_v50 }
 0x63f   : > { %v958_v28 = vpack.c.bf16 %v957_v16, %v956_v25 }
 0x640   : > { %v1027_v20 = vmul.f32 1.442695, %v1024_v26  ;;  %v1345_v38 = vmul.f32 1.442695, %v1343_v34 }
 0x641   : > { %2012 = vmatmul.msk.bf16.vlgmr.msrb.gmra.mxu3 %vm775_vm9, %v958_v28 }
 0x642   : > { %2225 = vpow2.f32 %v1027_v20 }
 0x648   : > { %v2725_v32 = vpop.eup %2225 }
 0x649   : > { %v1032_v62 = vsel %vm779_vm10, %v2725_v32, 0.0 }
 0x64a   : > { %1033 = vadd.xlane.f32.xlu2 %v1032_v62 }
 0x64b   : > { %1202 = vrot.lane.b32.xlu0 %v1130_v33, %s2349_s30 }
 0x64e   : > { %1131 = vrot.lane.b32.xlu1 %v1130_v33, %s2348_s29 }
 0x657   : > { %v1118_v14 = vpop.xlane.xlu1 %1117 }
 0x658   : > { %2227 = vrcp.f32 %v1118_v14 }
 0x65e   : > { %v2228_v39 = vpop.eup %2227 }
 0x65f   : > { %v1121_v21 = vpop.xlane.xlu0 %1120  ;;  %v1342_v35 = vpop.xlane.xlu1 %1341  ;;  %v1124_v43 = vmul.f32 %v2228_v39, %v2685_v37  ;;  %v1265_v37 = vsub.f32 %v2642_v7, %v2697_v45 }
 0x660   : > { %2229 = vrcp.f32 %v1121_v21  ;;  %v1344_v19 = vsub.f32 %v2689_v41, %v1342_v35 }
 0x661   : > { %2231 = vpow2.f32 %v1345_v38  ;;  %v1268_v48 = vmul.f32 1.442695, %v1265_v37 }
 0x662   : > { %v1347_v51 = vmul.f32 1.442695, %v1344_v19 }
 0x666   : > { %v2230_v36 = vpop.eup %2229 }
 0x667   : > { %v1125_v44 = vmul.f32 %v2230_v36, %v2691_v42  ;;  %v1181_v46 = vpop.xlane.xlu0 %1180  ;;  %v2738_v54 = vpop.eup %2231 }
 0x668   : > { %v1185_v47 = vsub.f32 %v2665_v18, %v1181_v46  ;;  %v1349_v4 = vsel %vm775_vm9, %v2738_v54, 0.0 }
 0x669   : > { %v1126_v49 = vpack.c.bf16 %v1125_v44, %v1124_v43 }
 0x66a   : > { %v1187_v52 = vmul.f32 1.442695, %v1185_v47 }
 0x66c   : > { %2233 = vpow2.f32 %v1187_v52 }
 0x66d   : > { %2235 = vpow2.f32 %v1347_v51 }
 0x66e   : > { %2237 = vpow2.f32 %v1266_v27 }
 0x66f   : > { %2239 = vpow2.f32 %v1268_v48 }
 0x672   : > { %v2234_v41 = vpop.eup %2233 }
 0x673   : > { %v1191_v42 = vsel %vm775_vm9, %v2234_v41, 0.0  ;;  %v2743_v18 = vpop.eup %2235 }
 0x674   : > { %1192 = vadd.xlane.f32.xlu2 %v1191_v42  ;;  %v1352_v55 = vsel %vm779_vm10, %v2743_v18, 0.0  ;;  %v2749_v56 = vpop.eup %2237 }
 0x675   : > { %1350 = vadd.xlane.f32.xlu0 %v1349_v4  ;;  %v1270_v7 = vsel %vm775_vm9, %v2749_v56, 0.0  ;;  %v2240_v45 = vpop.eup %2239  ;;  %v2108_v4 = vld [vmem:[%s2458_s11] sm:$0xff] }
 0x676   : > { %v1273_v59 = vsel %vm779_vm10, %v2240_v45, 0.0 }
 0x678   : > { %1353 = vadd.xlane.f32.xlu1 %v1352_v55 }
 0x67c   : > { %1271 = vadd.xlane.f32.xlu2 %v1270_v7 }
 0x681   : > { %v823_v57 = vpop.f32.mrf.mxu0 }
 0x682   : > { %828 = vst.msk [vmem:[#allocation3] sm:$0xff] %vm754_vm4, %v823_v57 }
 0x684   : > { %1274 = vadd.xlane.f32.xlu2 %v1273_v59 }
 0x689   : > { %v825_v60 = vpop.f32.mrf.mxu0  ;;  %904 = vrot.lane.b32.xlu0 %v2654_v12, %s2355_s28 }
 0x68a   : > { %830 = vst.msk [vmem:[#allocation3 + $0x8] sm:$0xf] %vm829_vm11, %v825_v60 }
 0x69c   : > { %1281 = vrot.lane.b32.xlu2 %v1130_v33, %s2354_s21 }
 0x6a4   : > { %1360 = vrot.lane.b32.xlu2 %v1130_v33, %s2353_s12 }
 0x6a8   : > { %v1196_v58 = vpop.xlane.xlu1 %1195 }
 0x6aa   : > { %v1031_v53 = vpop.xlane.xlu0 %1030 }
 0x6ab   : > { %2241 = vrcp.f32 %v1031_v53 }
 0x6ac   : > { %902 = vrot.lane.b32.xlu2 %v2646_v9, %s2355_s28 }
 0x6b1   : > { %v2242_v5 = vpop.eup %2241 }
 0x6b2   : > { %v1037_v11 = vmul.f32 %v2242_v5, %v2714_v63 }
 0x6bd   : > { %v1034_v0 = vpop.xlane.xlu2 %1033  ;;  %v1203_v2 = vpop.permute.xlu0 %1202 }
 0x6be   : > { %2243 = vrcp.f32 %v1034_v0  ;;  %v1208_v3 = vsel %vm810_vm8, %v1203_v2, 0 }
 0x6bf   : > { %1217 = vmatpush.bf16.msrb.mxu0 %v1208_v3  ;;  %2245 = vrcp.f32 %v1196_v58  ;;  %v2798_v3 = vld [vmem:[%s2448_s25] sm:$0xff] }
 0x6c0   : > { %v1132_v61 = vpop.permute.xlu1 %1131 }
 0x6c1   : > { %v1137_v12 = vsel %vm810_vm8, %v1132_v61, 0  ;;  %v1401_v61 = vperm.slane %v2798_v3, 5 }
 0x6c2   : > { %1146 = vmatpush.bf16.msra.mxu3 %v1137_v12 }
 0x6c4   : > { %v2244_v6 = vpop.eup %2243  ;;  %v976_v8 = vpop.f32.mrf.mxu3 }
 0x6c5   : > { %v1038_v9 = vmul.f32 %v2244_v6, %v2725_v32  ;;  %983 = vrot.lane.b32.xlu2 %v976_v8, %s2356_s23  ;;  %2016 = vmatmul.msk.bf16.vlgmr.msra.gmra.mxu3 %vm775_vm9, %v1126_v49  ;;  %v2246_v22 = vpop.eup %2245  ;;  %v2276_v6 = vld [vmem:[#allocation2] sm:$0xff] }
 0x6c6   : > { %v1200_v63 = vmul.f32 %v2246_v22, %v2710_v10 }
 0x6c7   : > { %v1039_v13 = vpack.c.bf16 %v1038_v9, %v1037_v11 }
 0x6c9   : > { %2014 = vmatmul.msk.bf16.vlgmr.msra.gmra.mxu0 %vm775_vm9, %v1039_v13 }
 0x6cc   : > { %v978_v15 = vpop.f32.mrf.mxu3 }
 0x6cd   : > { %985 = vrot.lane.b32.xlu2 %v978_v15, %s2356_s23  ;;  %v2277_v15 = vld [vmem:[#allocation2 + $0x8] sm:$0xff] }
 0x6e7   : > { %v1193_v1 = vpop.xlane.xlu2 %1192 }
 0x6e8   : > { %2247 = vrcp.f32 %v1193_v1  ;;  %v1351_v40 = vpop.xlane.xlu0 %1350 }
 0x6eb   : > { %v1354_v28 = vpop.xlane.xlu1 %1353 }
 0x6ee   : > { %v2248_v23 = vpop.eup %2247 }
 0x6ef   : > { %v1199_v24 = vmul.f32 %v2248_v23, %v2234_v41  ;;  %v1272_v16 = vpop.xlane.xlu2 %1271 }
 0x6f0   : > { %2249 = vrcp.f32 %v1272_v16 }
 0x6f1   : > { %v1201_v25 = vpack.c.bf16 %v1200_v63, %v1199_v24  ;;  %v2278_v24 = vld [vmem:[#allocation2 + $0x10] sm:$0xff] }
 0x6f3   : > { %2018 = vmatmul.msk.bf16.vlgmr.msrb.gmra.mxu0 %vm775_vm9, %v1201_v25 }
 0x6f6   : > { %v2250_v30 = vpop.eup %2249 }
 0x6f7   : > { %v1275_v26 = vpop.xlane.xlu2 %1274  ;;  %v1278_v10 = vmul.f32 %v2250_v30, %v2749_v56 }
 0x6f8   : > { %2251 = vrcp.f32 %v1275_v26 }
 0x6f9   : > { %2253 = vrcp.f32 %v1354_v28 }
 0x6fa   : > { %2255 = vrcp.f32 %v1351_v40 }
 0x6fb   : > { %v905_v20 = vpop.permute.xlu0 %904 }
 0x6fc   : > { %911 = vst.msk [vmem:[#allocation3 + $0x8] sm:$0xf] %vm910_vm13, %v905_v20 }
 0x6fe   : > { %v2252_v31 = vpop.eup %2251 }
 0x6ff   : > { %v1279_v32 = vmul.f32 %v2252_v31, %v2240_v45  ;;  %v1282_v33 = vpop.permute.xlu2 %1281  ;;  %v2254_v21 = vpop.eup %2253 }
 0x700   : > { %v1287_v62 = vsel %vm810_vm8, %v1282_v33, 0  ;;  %v2256_v29 = vpop.eup %2255  ;;  %v1358_v34 = vmul.f32 %v2254_v21, %v2743_v18  ;;  %v2109_v18 = vld [vmem:[%s2458_s11 + $0x8] sm:$0xff] }
 0x701   : > { %v1280_v14 = vpack.c.bf16 %v1279_v32, %v1278_v10  ;;  %1296 = vmatpush.bf16.msrb.mxu3 %v1287_v62  ;;  %v1357_v39 = vmul.f32 %v2256_v29, %v2738_v54  ;;  %1426 = vmatpush.bf16.msra.mxu1 %v2109_v18 }
 0x703   : > { %v1359_v19 = vpack.c.bf16 %v1358_v34, %v1357_v39 }
 0x704   : > { %2020 = vmatmul.msk.bf16.vlgmr.msrb.gmra.mxu3 %vm775_vm9, %v1280_v14 }
 0x705   : > { %1427 = vmatpush.bf16.msra.mxu1 %v2108_v4 }
 0x707   : > { %v1361_v35 = vpop.permute.xlu2 %1360 }
 0x708   : > { %v1366_v36 = vsel %vm810_vm8, %v1361_v35, 0 }
 0x709   : > { %1375 = vmatpush.bf16.msra.mxu0 %v1366_v36  ;;  %v2111_v36 = vld [vmem:[%s2463_s20 + $0x8] sm:$0xff] }
 0x70a   : > { %1549 = vmatpush.bf16.msra.mxu3 %v2111_v36 }
 0x70c   : > { %2022 = vmatmul.msk.bf16.vlgmr.msra.gmra.mxu0 %vm775_vm9, %v1359_v19 }
 0x70f   : > { %v903_v38 = vpop.permute.xlu2 %902 }
 0x710   : > { %909 = vst.msk [vmem:[#allocation3] sm:$0xff] %vm908_vm14, %v903_v38 }
 0x71f   : > { %v984_v43 = vpop.permute.xlu2 %983 }
 0x720   : > { %990 = vst.msk [vmem:[#allocation3] sm:$0xff] %vm989_vm15, %v984_v43  ;;  %v2110_v43 = vld [vmem:[%s2463_s20] sm:$0xff] }
 0x721   : > { %1550 = vmatpush.bf16.msra.mxu3 %v2110_v43 }
 0x727   : > { %v986_v44 = vpop.permute.xlu2 %985 }
 0x728   : > { %992 = vst.msk [vmem:[#allocation3 + $0x8] sm:$0xf] %vm991_vm0, %v986_v44 }
 0x746   : > { %v1057_v46 = vpop.f32.mrf.mxu0 }
 0x747   : > { %1064 = vrot.lane.b32.xlu0 %v1057_v46, %s2357_s26 }
 0x748   : > { %v1148_v47 = vpop.f32.mrf.mxu3 }
 0x749   : > { %1153 = vst.msk [vmem:[#allocation3 + $0xc] sm:$0xff] %vm754_vm4, %v1148_v47 }
 0x74e   : > { %v1059_v50 = vpop.f32.mrf.mxu0 }
 0x750   : > { %v1150_v49 = vpop.f32.mrf.mxu3 }
 0x751   : > { %1154 = vst.msk [vmem:[#allocation3 + $0x14] sm:$0xf] %vm829_vm11, %v1150_v49 }
 0x770   : > { %v1219_v51 = vpop.f32.mrf.mxu0 }
 0x771   : > { %1226 = vrot.lane.b32.xlu1 %v1219_v51, %s2355_s28 }
 0x778   : > { %v1221_v52 = vpop.f32.mrf.mxu0 }
 0x779   : > { %1066 = vrot.lane.b32.xlu1 %v1059_v50, %s2357_s26  ;;  %1228 = vrot.lane.b32.xlu0 %v1221_v52, %s2355_s28 }
 0x787   : > { %v1298_v27 = vpop.f32.mrf.mxu3 }
 0x788   : > { %1305 = vrot.lane.b32.xlu2 %v1298_v27, %s2356_s23 }
 0x789   : > { %v1377_v54 = vpop.f32.mrf.mxu0 }
 0x78f   : > { %v1300_v41 = vpop.f32.mrf.mxu3 }
 0x790   : > { %1307 = vrot.lane.b32.xlu1 %v1300_v41, %s2356_s23  ;;  %1384 = vrot.lane.b32.xlu2 %v1377_v54, %s2357_s26 }
 0x791   : > { %v1379_v37 = vpop.f32.mrf.mxu0 }
 0x798   : > { %1386 = vrot.lane.b32.xlu2 %v1379_v37, %s2357_s26 }
 0x7b9   : > { %v1065_v42 = vpop.permute.xlu0 %1064 }
 0x7ba   : > { %1071 = vst.msk [vmem:[#allocation3] sm:$0xff] %vm1070_vm1, %v1065_v42 }
 0x7c1   : > { %v1392_v57 = vld [vmem:[#allocation3] sm:$0xff] }
 0x7e2   : > { %v1306_v48 = vpop.permute.xlu2 %1305 }
 0x7e3   : > { %v1227_v55 = vpop.permute.xlu1 %1226 }
 0x7e4   : > { %1232 = vst.msk [vmem:[#allocation3 + $0xc] sm:$0xff] %vm908_vm14, %v1227_v55 }
 0x7e5   : > { %1311 = vst.msk [vmem:[#allocation3 + $0xc] sm:$0xff] %vm989_vm15, %v1306_v48 }
 0x7ea   : > { %v1385_v56 = vpop.permute.xlu2 %1384 }
 0x7eb   : > { %1390 = vst.msk [vmem:[#allocation3 + $0xc] sm:$0xff] %vm1070_vm1, %v1385_v56  ;;  %v1229_v7 = vpop.permute.xlu0 %1228  ;;  %v1067_v45 = vpop.permute.xlu1 %1066 }
 0x7ec   : > { %1233 = vst.msk [vmem:[#allocation3 + $0x14] sm:$0xf] %vm910_vm13, %v1229_v7 }
 0x7ed   : > { %1073 = vst.msk [vmem:[#allocation3 + $0x8] sm:$0xf] %vm1072_vm2, %v1067_v45 }
 0x7f2   : > { %v1387_v58 = vpop.permute.xlu2 %1386 }
 0x7f4   : > { %v1393_v59 = vld [vmem:[#allocation3 + $0x8] sm:$0xff] }
 0x7f5   : > { %v1395_v60 = vpack.c.bf16 %v1393_v59, %v1392_v57  ;;  %v1507_v57 = vperm.slane %v2798_v3, 6 }
 0x7f7   : > { %2031 = vmatmul.msk.bf16.vlgmr.msra.gmra.mxu1 %vm586_vm12, %v1395_v60 }
 0x802   : > { %v1308_v53 = vpop.permute.xlu1 %1307 }
 0x803   : > { %1312 = vst.msk [vmem:[#allocation3 + $0x14] sm:$0xf] %vm991_vm0, %v1308_v53 }
 0x804   : > { %1391 = vst.msk [vmem:[#allocation3 + $0x14] sm:$0xf] %vm1072_vm2, %v1387_v58  ;;  %v1511_v58 = vperm.slane %v2798_v3, 7 }
 0x80b   : > { %v1394_v0 = vld [vmem:[#allocation3 + $0x10] sm:$0xff] }
 0x80c   : > { %v1396_v2 = vpack.c.bf16 %v1394_v0, %v1394_v0 }
 0x80e   : > { %2032 = vmatmul.msk.bf16.gmra.mxu1 %vm586_vm12, %v1396_v2 }
 0x874   : > { %v1429_v12 = vpop.f32.mrf.mxu1 }
 0x875   : > { %v1430_v5 = vadd.f32 %v1429_v12, %v1401_v61 }
 0x877   : > { %v2801_v8 = vadd.f32 %v2276_v6, %v1430_v5 }
 0x879   : > { %v1441_v11 = vsel %vm586_vm12, %v2801_v8, 0.0 }
 0x87a   : > { %1442 = vadd.xlane.f32.xlu0 %v1441_v11 }
 0x87c   : > { %v1431_v9 = vpop.f32.mrf.mxu1 }
 0x87d   : > { %v1432_v13 = vadd.f32 %v1431_v9, %v1401_v61 }
 0x87f   : > { %v2805_v1 = vadd.f32 %v2277_v15, %v1432_v13 }
 0x881   : > { %v1444_v22 = vsel %vm586_vm12, %v2805_v1, 0.0 }
 0x882   : > { %1445 = vadd.xlane.f32.xlu1 %v1444_v22 }
 0x88b   : > { %v1434_v23 = vpop.f32.mrf.mxu1 }
 0x88c   : > { %v1435_v63 = vadd.f32 %v1434_v23, %v1401_v61 }
 0x88e   : > { %v2809_v16 = vadd.f32 %v2278_v24, %v1435_v63 }
 0x890   : > { %v1447_v25 = vsel %vm586_vm12, %v2809_v16, 0.0 }
 0x891   : > { %1448 = vadd.xlane.f32.xlu2 %v1447_v25 }
 0x893   : > { %v1436_v40 = vpop.f32.mrf.mxu1 }
 0x8ed   : > { %v1443_v26 = vpop.xlane.xlu0 %1442 }
 0x8ee   : > { %v1450_v28 = vmul.f32 %v1443_v26, %v2496_v17  ;;  %v2119_v26 = vld [vmem:[%s2469_s24 + $0x38] sm:$0xff] }
 0x8ef   : > { %1691 = vmatpush.bf16.msra.mxu2 %v2119_v26 }
 0x8f0   : > { %v1453_v20 = vsub.f32 %v2801_v8, %v1450_v28  ;;  %v2118_v28 = vld [vmem:[%s2469_s24 + $0x30] sm:$0xff] }
 0x8f2   : > { %v1456_v30 = vmul.f32 %v1453_v20, %v1453_v20 }
 0x8f3   : > { %1692 = vmatpush.bf16.msra.mxu2 %v2118_v28 }
 0x8f4   : > { %v1459_v31 = vsel %vm586_vm12, %v1456_v30, 0.0  ;;  %v2116_v30 = vld [vmem:[%s2469_s24 + $0x20] sm:$0xff] }
 0x8f5   : > { %1460 = vadd.xlane.f32.xlu0 %v1459_v31  ;;  %v1446_v10 = vpop.xlane.xlu1 %1445  ;;  %v2115_v31 = vld [vmem:[%s2469_s24 + $0x18] sm:$0xff] }
 0x8f6   : > { %v1451_v32 = vmul.f32 %v1446_v10, %v2496_v17  ;;  %v2183_v10 = vld [vmem:[%s2907_s27] ss:$0 sm:$0xff] }
 0x8f8   : > { %v1454_v33 = vsub.f32 %v2805_v1, %v1451_v32 }
 0x8fa   : > { %v1457_v62 = vmul.f32 %v1454_v33, %v1454_v33 }
 0x8fc   : > { %v1462_v14 = vsel %vm586_vm12, %v1457_v62, 0.0 }
 0x8fd   : > { %1463 = vadd.xlane.f32.xlu1 %v1462_v14 }
 0x904   : > { %v1449_v21 = vpop.xlane.xlu2 %1448 }
 0x905   : > { %v1452_v29 = vmul.f32 %v1449_v21, %v2496_v17  ;;  %v2113_v21 = vld [vmem:[%s2469_s24 + $0x8] sm:$0xff] }
 0x907   : > { %v1455_v34 = vsub.f32 %v2809_v16, %v1452_v29 }
 0x909   : > { %v1458_v35 = vmul.f32 %v1455_v34, %v1455_v34 }
 0x90b   : > { %v1465_v39 = vsel %vm586_vm12, %v1458_v35, 0.0  ;;  %v2112_v35 = vld [vmem:[%s2469_s24] sm:$0xff] }
 0x90c   : > { %1466 = vadd.xlane.f32.xlu2 %v1465_v39 }
 0x968   : > { %v1461_v19 = vpop.xlane.xlu0 %1460 }
 0x969   : > { %v1468_v38 = vmul.f32 %v1461_v19, %v2496_v17 }
 0x96b   : > { %v1471_v44 = vadd.f32 1e-05, %v1468_v38 }
 0x96d   : > { %2257 = vrsqrt.f32 %v1471_v44  ;;  %vm1480_vm4 = vweird.f32 %v1471_v44 }
 0x970   : > { %v1464_v46 = vpop.xlane.xlu1 %1463 }
 0x971   : > { %v1469_v47 = vmul.f32 %v1464_v46, %v2496_v17 }
 0x973   : > { %v2258_v49 = vpop.eup %2257  ;;  %v1472_v50 = vadd.f32 1e-05, %v1469_v47 }
 0x974   : > { %v1475_v51 = vmul.f32 %v2258_v49, %v1471_v44  ;;  %vm1481_vm3 = vweird.f32 %v2258_v49 }
 0x975   : > { %2259 = vrsqrt.f32 %v1472_v50  ;;  %vm1482_vm5 = vmor %vm1480_vm4, %vm1481_vm3  ;;  %vm1490_vm7 = vweird.f32 %v1472_v50 }
 0x976   : > { %v1476_v52 = vmul.f32 %v2258_v49, %v1475_v51 }
 0x978   : > { %v1477_v27 = vmul.f32 0.5, %v1476_v52 }
 0x97a   : > { %v1478_v54 = vsub.f32 1.5, %v1477_v27 }
 0x97b   : > { %v2260_v41 = vpop.eup %2259 }
 0x97c   : > { %v1479_v37 = vmul.f32 %v2258_v49, %v1478_v54  ;;  %v1485_v42 = vmul.f32 %v2260_v41, %v1472_v50  ;;  %vm1491_vm6 = vweird.f32 %v2260_v41 }
 0x97d   : > { %vm1492_vm8 = vmor %vm1490_vm7, %vm1491_vm6 }
 0x97e   : > { %v1486_v18 = vmul.f32 %v2260_v41, %v1485_v42  ;;  %v1483_v48 = vsel %vm1482_vm5, %v2258_v49, %v1479_v37 }
 0x97f   : > { %v1467_v4 = vpop.xlane.xlu2 %1466  ;;  %v1504_v59 = vmul.f32 %v1483_v48, %v1453_v20  ;;  %v2117_v20 = vld [vmem:[%s2469_s24 + $0x28] sm:$0xff] }
 0x980   : > { %v1487_v55 = vmul.f32 0.5, %v1486_v18  ;;  %v1470_v56 = vmul.f32 %v1467_v4, %v2496_v17  ;;  %1693 = vmatpush.bf16.msra.mxu2 %v2117_v20 }
 0x981   : > { %v1508_v0 = vmul.f32 %v1507_v57, %v1504_v59 }
 0x982   : > { %v1488_v7 = vsub.f32 1.5, %v1487_v55  ;;  %v1473_v45 = vadd.f32 1e-05, %v1470_v56 }
 0x983   : > { %v1512_v5 = vadd.f32 %v1511_v58, %v1508_v0 }
 0x984   : > { %v1489_v60 = vmul.f32 %v2260_v41, %v1488_v7  ;;  %2261 = vrsqrt.f32 %v1473_v45  ;;  %vm1500_vm10 = vweird.f32 %v1473_v45  ;;  %1694 = vmatpush.bf16.msra.mxu2 %v2116_v30  ;;  %v2184_v30 = vld [vmem:[%s2448_s25 + $0x8] ss:$0 sm:$0xff] }
 0x986   : > { %v1493_v53 = vsel %vm1492_vm8, %v2260_v41, %v1489_v60 }
 0x987   : > { %v1505_v2 = vmul.f32 %v1493_v53, %v1454_v33  ;;  %v2114_v33 = vld [vmem:[%s2469_s24 + $0x10] sm:$0xff] }
 0x988   : > { %1695 = vmatpush.bf16.msra.mxu2 %v2115_v31 }
 0x989   : > { %v1509_v61 = vmul.f32 %v1507_v57, %v1505_v2 }
 0x98a   : > { %v2262_v12 = vpop.eup %2261 }
 0x98b   : > { %v1513_v6 = vadd.f32 %v1511_v58, %v1509_v61  ;;  %v1495_v11 = vmul.f32 %v2262_v12, %v1473_v45  ;;  %vm1501_vm9 = vweird.f32 %v2262_v12 }
 0x98c   : > { %vm1502_vm11 = vmor %vm1500_vm10, %vm1501_vm9  ;;  %1696 = vmatpush.bf16.msra.mxu2 %v2114_v33 }
 0x98d   : > { %v1496_v9 = vmul.f32 %v2262_v12, %v1495_v11  ;;  %v1515_v13 = vpack.c.bf16 %v1513_v6, %v1512_v5 }
 0x98f   : > { %v1497_v15 = vmul.f32 0.5, %v1496_v9  ;;  %2041 = vmatmul.msk.bf16.vlgmr.msra.gmra.mxu3 %vm586_vm12, %v1515_v13 }
 0x990   : > { %1697 = vmatpush.bf16.msra.mxu2 %v2113_v21 }
 0x991   : > { %v1498_v22 = vsub.f32 1.5, %v1497_v15 }
 0x993   : > { %v1499_v23 = vmul.f32 %v2262_v12, %v1498_v22 }
 0x994   : > { %1698 = vmatpush.bf16.msra.mxu2 %v2112_v35 }
 0x995   : > { %v1503_v3 = vsel %vm1502_vm11, %v2262_v12, %v1499_v23 }
 0x996   : > { %v1506_v63 = vmul.f32 %v1503_v3, %v1455_v34 }
 0x998   : > { %v1510_v24 = vmul.f32 %v1507_v57, %v1506_v63 }
 0x99a   : > { %v1514_v25 = vadd.f32 %v1511_v58, %v1510_v24 }
 0x99c   : > { %v1516_v40 = vpack.c.bf16 %v1514_v25, %v1514_v25 }
 0x99f   : > { %2042 = vmatmul.msk.bf16.gmra.mxu3 %vm586_vm12, %v1516_v40 }
 0xa12   : > { %v1552_v32 = vpop.f32.mrf.mxu3 }
 0xa13   : > { %v1553_v62 = vadd.f32 %v2183_v10, %v1552_v32 }
 0xa15   : > { %v2043_v14 = vmul.f32 -1.702, %v1553_v62 }
 0xa17   : > { %v1567_v29 = vmul.f32 1.442695, %v2043_v14 }
 0xa19   : > { %2263 = vpow2.f32 %v1567_v29 }
 0xa1a   : > { %v1554_v34 = vpop.f32.mrf.mxu3 }
 0xa1b   : > { %v1555_v39 = vadd.f32 %v2183_v10, %v1554_v34 }
 0xa1d   : > { %v2044_v36 = vmul.f32 -1.702, %v1555_v39 }
 0xa1f   : > { %v2264_v19 = vpop.eup %2263  ;;  %v1569_v38 = vmul.f32 1.442695, %v2044_v36 }
 0xa20   : > { %v1573_v43 = vadd.f32 1.0, %v2264_v19 }
 0xa21   : > { %2265 = vpow2.f32 %v1569_v38 }
 0xa22   : > { %2267 = vrcp.f32 %v1573_v43  ;;  %v1557_v44 = vpop.f32.mrf.mxu3  ;;  %v1587_v56 = vand.u32 2147483648, %v1573_v43  ;;  %vm1581_vm14 = vweird.f32 %v1573_v43  ;;  %v1585_v7 = vand.u32 2147483647, %v1573_v43 }
 0xa23   : > { %v1558_v46 = vadd.f32 %v2183_v10, %v1557_v44 }
 0xa24   : > { %v1588_v58 = vor.u32 1.1754944e-38, %v1587_v56  ;;  %vm1586_vm1 = vcmp.eq.f32.partialorder %v1585_v7, 8.507059e+37 }
 0xa25   : > { %v2045_v47 = vmul.f32 -1.702, %v1558_v46 }
 0xa27   : > { %v2266_v49 = vpop.eup %2265  ;;  %v1571_v50 = vmul.f32 1.442695, %v2045_v47 }
 0xa28   : > { %v2268_v51 = vpop.eup %2267  ;;  %v1574_v52 = vadd.f32 1.0, %v2266_v49 }
 0xa29   : > { %v1577_v27 = vmul.f32 %v2268_v51, %v1573_v43  ;;  %2269 = vpow2.f32 %v1571_v50  ;;  %vm1582_vm13 = vweird.f32 %v2268_v51 }
 0xa2a   : > { %2271 = vrcp.f32 %v1574_v52  ;;  %v1559_v54 = vpop.f32.mrf.mxu3  ;;  %vm1583_vm15 = vmor %vm1581_vm14, %vm1582_vm13  ;;  %v1602_v57 = vand.u32 2147483648, %v1574_v52  ;;  %v1600_v53 = vand.u32 2147483647, %v1574_v52  ;;  %vm1596_vm2 = vweird.f32 %v1574_v52 }
 0xa2b   : > { %v1578_v41 = vsub.f32 1.0, %v1577_v27 }
 0xa2c   : > { %v1603_v12 = vor.u32 1.1754944e-38, %v1602_v57  ;;  %vm1601_vm4 = vcmp.eq.f32.partialorder %v1600_v53, 8.507059e+37 }
 0xa2d   : > { %v1579_v37 = vmul.f32 %v2268_v51, %v1578_v41 }
 0xa2f   : > { %v2270_v42 = vpop.eup %2269  ;;  %v1580_v48 = vadd.f32 %v2268_v51, %v1579_v37 }
 0xa30   : > { %v2272_v18 = vpop.eup %2271  ;;  %v1575_v4 = vadd.f32 1.0, %v2270_v42 }
 0xa31   : > { %v1592_v55 = vmul.f32 %v2272_v18, %v1574_v52  ;;  %v1584_v59 = vsel %vm1583_vm15, %v2268_v51, %v1580_v48  ;;  %vm1597_vm0 = vweird.f32 %v2272_v18 }
 0xa32   : > { %2273 = vrcp.f32 %v1575_v4  ;;  %v1589_v61 = vsel %vm1586_vm1, %v1588_v58, %v1584_v59  ;;  %vm1598_vm3 = vmor %vm1596_vm2, %vm1597_vm0  ;;  %v1617_v63 = vand.u32 2147483648, %v1575_v4  ;;  %vm1611_vm6 = vweird.f32 %v1575_v4 }
 0xa33   : > { %v1593_v45 = vsub.f32 1.0, %v1592_v55  ;;  %v1621_v9 = vmul.f32 %v1589_v61, %v1553_v62  ;;  %v1615_v24 = vand.u32 2147483647, %v1575_v4 }
 0xa34   : > { %v1618_v40 = vor.u32 1.1754944e-38, %v1617_v63 }
 0xa35   : > { %v1594_v60 = vmul.f32 %v2272_v18, %v1593_v45  ;;  %vm1616_vm8 = vcmp.eq.f32.partialorder %v1615_v24, 8.507059e+37 }
 0xa37   : > { %v1595_v0 = vadd.f32 %v2272_v18, %v1594_v60 }
 0xa38   : > { %v2274_v2 = vpop.eup %2273 }
 0xa39   : > { %v1599_v5 = vsel %vm1598_vm3, %v2272_v18, %v1595_v0  ;;  %v1607_v6 = vmul.f32 %v2274_v2, %v1575_v4  ;;  %vm1612_vm5 = vweird.f32 %v2274_v2 }
 0xa3a   : > { %v1604_v11 = vsel %vm1601_vm4, %v1603_v12, %v1599_v5  ;;  %vm1613_vm7 = vmor %vm1611_vm6, %vm1612_vm5 }
 0xa3b   : > { %v1622_v13 = vmul.f32 %v1604_v11, %v1555_v39  ;;  %v1608_v15 = vsub.f32 1.0, %v1607_v6 }
 0xa3d   : > { %v1624_v22 = vpack.c.bf16 %v1622_v13, %v1621_v9  ;;  %v1609_v23 = vmul.f32 %v2274_v2, %v1608_v15 }
 0xa3f   : > { %1699 = vmatmul.bf16.vlgmr.msra.gmra.mxu2 %v1624_v22  ;;  %v1610_v3 = vadd.f32 %v2274_v2, %v1609_v23 }
 0xa41   : > { %v1614_v25 = vsel %vm1613_vm7, %v2274_v2, %v1610_v3 }
 0xa42   : > { %v1619_v26 = vsel %vm1616_vm8, %v1618_v40, %v1614_v25 }
 0xa43   : > { %v1623_v28 = vmul.f32 %v1619_v26, %v1558_v46 }
 0xa45   : > { %v1625_v20 = vpack.c.bf16 %v1623_v28, %v1623_v28 }
 0xa4f   : > { %1704 = vmatmul.bf16.gmra.mxu2 %v1625_v20 }
 0xac2   : > { %v1700_v31 = vpop.f32.mrf.mxu2 }
 0xac3   : > { %v1701_v10 = vadd.f32 %v2184_v30, %v1700_v31 }
 0xac5   : > { %v1709_v32 = vadd.f32 %v1701_v10, %v2801_v8 }
 0xac7   : > { %1712 = vst.msk [vmem:[#allocation2] sm:$0xff] %vm586_vm12, %v1709_v32 }
 0xaca   : > { %v1702_v33 = vpop.f32.mrf.mxu2 }
 0xacb   : > { %v1703_v62 = vadd.f32 %v2184_v30, %v1702_v33 }
 0xacd   : > { %v1710_v14 = vadd.f32 %v1703_v62, %v2805_v1 }
 0xacf   : > { %1713 = vst.msk [vmem:[#allocation2 + $0x8] sm:$0xff] %vm586_vm12, %v1710_v14 }
 0xad2   : > { %v1705_v21 = vpop.f32.mrf.mxu2 }
 0xad3   : > { %v1706_v29 = vadd.f32 %v2184_v30, %v1705_v21 }
 0xad5   : > { %v1711_v34 = vadd.f32 %v1706_v29, %v2809_v16 }
 0xad6   : > { %1718 = sbr.rel (%p2078_p6) target bundleno = 3192 (0xc78), region = 68 }
 0xad7   : > { %1714 = vst.msk [vmem:[#allocation2 + $0x10] sm:$0xff] %vm586_vm12, %v1711_v34 }
 0xada   : > { %v1707_v35 = vpop.f32.mrf.mxu2 }
 0xadb   : > { %vm1782_vm9 = vcmask 261124   ;;  %vm1721_vm10 = vcmask 257024   ;;  %v2123_v50 = vld [vmem:[%s2905_s9 + $0x8] sm:$0xff]  ;;  %v2122_v51 = vld [vmem:[%s2905_s9] sm:$0xff] }
 0xadc   : > { %v1783_v8 = vsel %vm1782_vm9, %v1710_v14, 0.0  ;;  %v1722_v39 = vsel %vm1721_vm10, %v1709_v32, 0.0  ;;  %1835 = vmatpush.bf16.msra.mxu1 %v2123_v50  ;;  %v2121_v52 = vld [vmem:[%s2905_s9 + $0x8] sm:$0xff]  ;;  %v2120_v41 = vld [vmem:[%s2905_s9] sm:$0xff] }
 0xadd   : > { %1784 = vadd.xlane.f32.xlu0 %v1783_v8  ;;  %1774 = vmatpush.bf16.msra.mxu0 %v2121_v52  ;;  %v2279_v53 = vld [vmem:[%s2898_s2 + $0x2] ss:$0 sm:$0xff] }
 0xae0   : > { %1836 = vmatpush.bf16.msra.mxu1 %v2122_v51 }
 0xae1   : > { %1775 = vmatpush.bf16.msra.mxu0 %v2120_v41 }
 0xae5   : > { %1723 = vadd.xlane.f32.xlu0 %v1722_v39 }
 0xb50   : > { %v1785_v1 = vpop.xlane.xlu0 %1784 }
 0xb51   : > { %v1786_v36 = vmul.f32 %v1785_v1, %v2496_v17 }
 0xb53   : > { %v1787_v19 = vsub.f32 %v1710_v14, %v1786_v36 }
 0xb55   : > { %v1788_v38 = vmul.f32 %v1787_v19, %v1787_v19 }
 0xb57   : > { %v1789_v43 = vsel %vm1782_vm9, %v1788_v38, 0.0 }
 0xb58   : > { %1790 = vadd.xlane.f32.xlu1 %v1789_v43  ;;  %v1724_v16 = vpop.xlane.xlu0 %1723 }
 0xb59   : > { %v1725_v44 = vmul.f32 %v1724_v16, %v2496_v17 }
 0xb5b   : > { %v1726_v46 = vsub.f32 %v1709_v32, %v1725_v44 }
 0xb5d   : > { %v1727_v47 = vmul.f32 %v1726_v46, %v1726_v46 }
 0xb5f   : > { %v1728_v49 = vsel %vm1721_vm10, %v1727_v47, 0.0 }
 0xb60   : > { %1729 = vadd.xlane.f32.xlu1 %v1728_v49 }
 0xbcb   : > { %v1791_v27 = vpop.xlane.xlu1 %1790 }
 0xbcc   : > { %v1792_v54 = vmul.f32 %v1791_v27, %v2496_v17 }
 0xbce   : > { %v1793_v37 = vadd.f32 1e-05, %v1792_v54 }
 0xbd0   : > { %2281 = vrsqrt.f32 %v1793_v37  ;;  %vm1800_vm13 = vweird.f32 %v1793_v37 }
 0xbd3   : > { %v1730_v42 = vpop.xlane.xlu1 %1729 }
 0xbd4   : > { %v1731_v18 = vmul.f32 %v1730_v42, %v2496_v17  ;;  %v2280_v17 = vld [vmem:[%s2898_s2 + $0x3] ss:$0 sm:$0xff] }
 0xbd6   : > { %v2282_v4 = vpop.eup %2281  ;;  %v1732_v48 = vadd.f32 1e-05, %v1731_v18 }
 0xbd7   : > { %v1795_v55 = vmul.f32 %v2282_v4, %v1793_v37  ;;  %vm1801_vm11 = vweird.f32 %v2282_v4 }
 0xbd8   : > { %2283 = vrsqrt.f32 %v1732_v48  ;;  %vm1802_vm14 = vmor %vm1800_vm13, %vm1801_vm11  ;;  %vm1739_vm0 = vweird.f32 %v1732_v48 }
 0xbd9   : > { %v1796_v56 = vmul.f32 %v2282_v4, %v1795_v55 }
 0xbdb   : > { %v1797_v7 = vmul.f32 0.5, %v1796_v56 }
 0xbdd   : > { %v1798_v45 = vsub.f32 1.5, %v1797_v7 }
 0xbde   : > { %v2284_v57 = vpop.eup %2283 }
 0xbdf   : > { %v1799_v59 = vmul.f32 %v2282_v4, %v1798_v45  ;;  %v1734_v60 = vmul.f32 %v2284_v57, %v1732_v48  ;;  %vm1740_vm15 = vweird.f32 %v2284_v57 }
 0xbe0   : > { %vm1741_vm1 = vmor %vm1739_vm0, %vm1740_vm15 }
 0xbe1   : > { %v1735_v58 = vmul.f32 %v2284_v57, %v1734_v60  ;;  %v1803_v0 = vsel %vm1802_vm14, %v2282_v4, %v1799_v59 }
 0xbe2   : > { %v1804_v2 = vmul.f32 %v1803_v0, %v1787_v19 }
 0xbe3   : > { %v1736_v61 = vmul.f32 0.5, %v1735_v58 }
 0xbe4   : > { %v1805_v12 = vmul.f32 %v2279_v53, %v1804_v2 }
 0xbe5   : > { %v1737_v5 = vsub.f32 1.5, %v1736_v61 }
 0xbe6   : > { %v1806_v6 = vadd.f32 %v2280_v17, %v1805_v12 }
 0xbe7   : > { %v1738_v11 = vmul.f32 %v2284_v57, %v1737_v5 }
 0xbe8   : > { %v1807_v9 = vpack.c.bf16 %v1806_v6, %v1806_v6 }
 0xbe9   : > { %v1742_v13 = vsel %vm1741_vm1, %v2284_v57, %v1738_v11 }
 0xbea   : > { %v1813_v15 = vrot.slane %v1807_v9, 2  ;;  %v1743_v22 = vmul.f32 %v1742_v13, %v1726_v46 }
 0xbec   : > { %2096 = vmatmul.msk.bf16.vlgmr.msra.gmra.mxu1 %vm586_vm12, %v1813_v15  ;;  %v1745_v23 = vmul.f32 %v2279_v53, %v1743_v22 }
 0xbee   : > { %v1747_v3 = vadd.f32 %v2280_v17, %v1745_v23 }
 0xbf0   : > { %v1748_v63 = vpack.c.bf16 %v1747_v3, %v1747_v3 }
 0xbf2   : > { %2087 = vmatmul.msk.bf16.vlgmr.msra.gmra.mxu0 %vm586_vm12, %v1748_v63 }
 0xc69   : > { %v1838_v24 = vpop.f32.mrf.mxu1 }
 0xc6a   : > { %1843 = vst.msk [vmem:[#allocation4 + $0x4] sm:$0xf] %vm1721_vm10, %v1838_v24 }
 0xc6f   : > { %v1777_v25 = vpop.f32.mrf.mxu0 }
 0xc70   : > { %1781 = vst.msk [vmem:[#allocation4] sm:$0xf] %vm1721_vm10, %v1777_v25 }
 0xc71   : > { %v1840_v40 = vpop.f32.mrf.mxu1 }
 0xc77   : > { %v1779_v26 = vpop.f32.mrf.mxu0 }
 0xc78 PF: > { %s2908_s26 = sadd.s32 4294967295, %s2339_s15   ;;  %s1854_s27 = sshll.u32 %s2906_s10, 4  ;;  %s1855_s27 = int_to_ptr.hbm [resolvable:$true] %s1854_s27 }
 0xc79   : > { %p2128_p7 = scmp.eq.s32.totalorder %s2908_s26, 1  ;;  %s2358_s13 = smov [#allocation4]  }
 0xc7a   : > { %s1852_s18 = sshll.u32 %s2358_s13, 4  ;;  %s2359_s25 = smov 4   ;;  %s1853_s18 = int_to_ptr.vmem [resolvable:$true] %s1852_s18 }
 0xc7b   : > { %2125 = dma.vmem_to_hbm [thread:$0]  (%p2128_p7), %s1853_s18, 128, %s1855_s27, [#allocation5], %s2348_s29, %s2348_s29, %s2359_s25  }
 0xc7c   : > { %2326 = dma.done.wait (%p2128_p7), [#allocation5], 128  }
 0xc7d   : > { %2328 = vsyncadd (%p2128_p7), [#allocation5], 4294967168 }
 0xc7e PF: > { %s21_s15 = sadd.s32 1, %s2339_s15   ;;  %s2909_s13 = smov %s2335_s14 }
 0xc7f   : > { %p18_p8 = scmp.ge.s32.totalorder %s21_s15, 4   ;;  %s2910_s14 = smov %s2912_s17 }
 0xc81   :  { %20 = sbr.rel (!%p18_p8) target bundleno = 2 (0x2), region = 116 }
 0xc86   :  { %1871 = vsyncpa [#allocation5], 1 }
 0xc87   :  { %1873 = vsyncpa [#allocation5 + $0x1], 1 }

</bundles_post_ra>
